<compile_context>
chip_gen: v7x
topology: tpu7x:2x2x1
jax: 0.10.0
libtpu: 0.0.40
codegen_flags: <defaults>
</compile_context>

<pallas_src>
import functools

import numpy as np
import jax
import jax.numpy as jnp
from jax.experimental import pallas as pl
from jax.experimental.pallas import tpu as pltpu


def _se_kernel(x_ref, w1_ref, w2_ref, wct_ref, mask_ref, o_ref, *, H, W):
    x2 = x_ref[...]                                    # (C, S) f32
    C, S = x2.shape
    HW = H * W
    P = HW + W + 1                                     # max |flat tap offset|

    # ---- AdaptiveAvgPool3d(1) + fc: sigmoid(W2 @ relu(W1 @ pooled)) ----
    pooled = jnp.sum(x2, axis=1, keepdims=True) * (1.0 / S)             # (C, 1)
    h1 = jnp.maximum(
        jnp.dot(w1_ref[...], pooled, preferred_element_type=jnp.float32), 0.0)
    yv = jax.nn.sigmoid(
        jnp.dot(w2_ref[...], h1, preferred_element_type=jnp.float32))  # (C, 1)

    # ---- att: Conv3d(C -> 1, k=3, pad=1, no bias) + sigmoid --------------
    # Channel contraction on the MXU: (27, C) @ (C, S) -> (27, S) tap maps.
    m = jnp.dot(wct_ref[...], x2, preferred_element_type=jnp.float32)
    masks = mask_ref[...]                                               # (27, S)

    # Zero-pad the tap maps along the lane axis once; each tap is then a
    # static (1, S) slice (out-of-volume neighbors read the zero pad; the
    # intra-row H/W wraps are killed by the precomputed masks).
    zpad = jnp.zeros((27, P), jnp.float32)
    mp = jnp.concatenate([zpad, m, zpad], axis=1)                       # (27, S + 2P)

    acc = m[13:14, :]                      # center tap (dd=dh=dw=0), always valid
    t = 0
    for dd in (-1, 0, 1):
        for dh in (-1, 0, 1):
            for dw in (-1, 0, 1):
                k = dd * HW + dh * W + dw
                if k != 0:
                    acc = acc + mp[t:t + 1, P + k:P + k + S] * masks[t:t + 1, :]
                t += 1
    att = jax.nn.sigmoid(acc)                                           # (1, S)

    # ---- x * att * y ------------------------------------------------------
    o_ref[...] = x2 * att * yv


def se_block(x, w1, w2, wc):
    """x: (B,C,D,H,W) f32; w1: (C//r, C); w2: (C, C//r); wc: (C,3,3,3)."""
    B, C, D, H, W = x.shape
    S = D * H * W
    Hd = w1.shape[0]
    x2 = x.reshape(B, C, S)
    wct = wc.reshape(C, 27).T                          # (27, C), taps row-major

    # Precompute the 27 per-tap boundary-validity masks (compile-time constants;
    # avoids in-kernel integer div/mod and per-tap selects).
    sidx = np.arange(S)
    di, hi, wi = sidx // (H * W), (sidx // W) % H, sidx % W
    mlist = []
    for dd in (-1, 0, 1):
        for dh in (-1, 0, 1):
            for dw in (-1, 0, 1):
                mlist.append(((di + dd >= 0) & (di + dd < D) &
                              (hi + dh >= 0) & (hi + dh < H) &
                              (wi + dw >= 0) & (wi + dw < W)).astype(np.float32))
    masks = jnp.asarray(np.stack(mlist))               # (27, S)

    kernel = functools.partial(_se_kernel, H=H, W=W)
    # One batch element per grid step.  For volumes whose (C, S) tile would not
    # fit VMEM, a D-tiled grid with a 1-plane halo plus a pooling pre-pass would
    # be the next step; not needed at these shapes.
    out = pl.pallas_call(
        kernel,
        out_shape=jax.ShapeDtypeStruct((B, C, S), jnp.float32),
        grid=(B,),
        in_specs=[
            pl.BlockSpec((None, C, S), lambda b: (b, 0, 0)),   # x (batch squeezed)
            pl.BlockSpec((Hd, C), lambda b: (0, 0)),           # w1
            pl.BlockSpec((C, Hd), lambda b: (0, 0)),           # w2
            pl.BlockSpec((27, C), lambda b: (0, 0)),           # wc^T
            pl.BlockSpec((27, S), lambda b: (0, 0)),           # tap validity masks
        ],
        out_specs=pl.BlockSpec((None, C, S), lambda b: (b, 0, 0)),
        compiler_params=pltpu.CompilerParams(
            dimension_semantics=("parallel",),
            vmem_limit_bytes=32 * 1024 * 1024),
    )(x2, w1, w2, wct, masks)
    return out.reshape(B, C, D, H, W)


def se_block_ref(x, w1, w2, wc):
    """Pure-JAX reference matching the PyTorch forward."""
    pooled = x.mean(axis=(2, 3, 4))                                     # (B, C)
    h1 = jnp.maximum(pooled @ w1.T, 0.0)
    y = jax.nn.sigmoid(h1 @ w2.T)                                       # (B, C)
    att = jax.lax.conv_general_dilated(
        x, wc[None], window_strides=(1, 1, 1), padding=[(1, 1)] * 3,
        dimension_numbers=("NCDHW", "OIDHW", "NCDHW"))
    att = jax.nn.sigmoid(att)                                           # (B,1,D,H,W)
    return x * att * y[:, :, None, None, None]


if __name__ == "__main__":
    B, C, D, H, W = 2, 32, 4, 8, 8
    reduction = 16
    Hd = C // reduction

    key = jax.random.PRNGKey(0)
    kx, k1, k2, k3 = jax.random.split(key, 4)
    x = jax.random.normal(kx, (B, C, D, H, W), jnp.float32)
    w1 = jax.random.normal(k1, (Hd, C), jnp.float32) * 0.2     # Linear(C, C//r), no bias
    w2 = jax.random.normal(k2, (C, Hd), jnp.float32) * 0.2     # Linear(C//r, C), no bias
    wc = jax.random.normal(k3, (C, 3, 3, 3), jnp.float32) * 0.1  # Conv3d(C, 1, 3), no bias

    out = jax.block_until_ready(se_block(x, w1, w2, wc))
    ref = jax.block_until_ready(se_block_ref(x, w1, w2, wc))
    assert out.shape == (B, C, D, H, W)
    assert jnp.allclose(out, ref, atol=1e-4, rtol=1e-4), float(jnp.max(jnp.abs(out - ref)))
    print("KERNEL_OK")
</pallas_src>

<mosaic_0001>
module attributes {stable_mosaic.version = 11 : i64} {
  func.func @_se_kernel(%arg0: i32, %arg1: memref<1x32x256xf32, #tpu.memory_space<vmem>>, %arg2: memref<2x32xf32, #tpu.memory_space<vmem>>, %arg3: memref<32x2xf32, #tpu.memory_space<vmem>>, %arg4: memref<27x32xf32, #tpu.memory_space<vmem>>, %arg5: memref<27x256xf32, #tpu.memory_space<vmem>>, %arg6: memref<1x32x256xf32, #tpu.memory_space<vmem>>) attributes {dimension_semantics = [#tpu.dimension_semantics<parallel>], iteration_bounds = array<i64: 2>, scalar_prefetch = 0 : i64, scratch_operands = 0 : i64, tpu.core_type = #tpu.core_type<tc>, window_params = [{transform_indices = @transform_0, window_bounds = array<i64: 1, 32, 256>}, {pipeline_mode = #tpu.pipeline_mode<synchronous>, transform_indices = @transform_1, window_bounds = array<i64: 2, 32>}, {pipeline_mode = #tpu.pipeline_mode<synchronous>, transform_indices = @transform_2, window_bounds = array<i64: 32, 2>}, {pipeline_mode = #tpu.pipeline_mode<synchronous>, transform_indices = @transform_3, window_bounds = array<i64: 27, 32>}, {pipeline_mode = #tpu.pipeline_mode<synchronous>, transform_indices = @transform_4, window_bounds = array<i64: 27, 256>}, {transform_indices = @transform_5, window_bounds = array<i64: 1, 32, 256>}]} {
    %c0 = arith.constant 0 : index
    %c0_0 = arith.constant 0 : index
    %c0_1 = arith.constant 0 : index
    %0 = vector.load %arg1[%c0, %c0_0, %c0_1] : memref<1x32x256xf32, #tpu.memory_space<vmem>>, vector<1x32x256xf32>
    %1 = vector.shape_cast %0 : vector<1x32x256xf32> to vector<32x256xf32>
    %cst = arith.constant dense<0.000000e+00> : vector<32xf32>
    %2 = vector.multi_reduction <add>, %1, %cst [1] : vector<32x256xf32> to vector<32xf32>
    %3 = vector.shape_cast %2 : vector<32xf32> to vector<32x1xf32>
    %cst_2 = arith.constant 3.906250e-03 : f32
    %4 = vector.broadcast %cst_2 : f32 to vector<32x1xf32>
    %5 = arith.mulf %3, %4 : vector<32x1xf32>
    %c0_3 = arith.constant 0 : index
    %c0_4 = arith.constant 0 : index
    %6 = vector.load %arg2[%c0_3, %c0_4] : memref<2x32xf32, #tpu.memory_space<vmem>>, vector<2x32xf32>
    %cst_5 = arith.constant dense<0.000000e+00> : vector<2x1xf32>
    %7 = tpu.matmul %6, %5, %cst_5 {dimension_numbers = #tpu.dot_dimension_numbers<[1], [0], [0], [1], [0, 0, 1, 1], [], []>} : vector<2x32xf32>, vector<32x1xf32>, vector<2x1xf32> -> vector<2x1xf32>
    %cst_6 = arith.constant 0.000000e+00 : f32
    %8 = vector.broadcast %cst_6 : f32 to vector<2x1xf32>
    %9 = arith.maximumf %7, %8 : vector<2x1xf32>
    %c0_7 = arith.constant 0 : index
    %c0_8 = arith.constant 0 : index
    %10 = vector.load %arg3[%c0_7, %c0_8] : memref<32x2xf32, #tpu.memory_space<vmem>>, vector<32x2xf32>
    %cst_9 = arith.constant dense<0.000000e+00> : vector<32x1xf32>
    %11 = tpu.matmul %10, %9, %cst_9 {dimension_numbers = #tpu.dot_dimension_numbers<[1], [0], [0], [1], [0, 0, 1, 1], [], []>} : vector<32x2xf32>, vector<2x1xf32>, vector<32x1xf32> -> vector<32x1xf32>
    %12 = arith.negf %11 : vector<32x1xf32>
    %13 = math.exp %12 : vector<32x1xf32>
    %cst_10 = arith.constant 1.000000e+00 : f32
    %14 = vector.broadcast %cst_10 : f32 to vector<32x1xf32>
    %15 = arith.addf %14, %13 : vector<32x1xf32>
    %16 = arith.divf %14, %15 : vector<32x1xf32>
    %c0_11 = arith.constant 0 : index
    %c0_12 = arith.constant 0 : index
    %17 = vector.load %arg4[%c0_11, %c0_12] : memref<27x32xf32, #tpu.memory_space<vmem>>, vector<27x32xf32>
    %cst_13 = arith.constant dense<0.000000e+00> : vector<27x256xf32>
    %18 = tpu.matmul %17, %1, %cst_13 {dimension_numbers = #tpu.dot_dimension_numbers<[1], [0], [0], [1], [0, 0, 1, 1], [], []>} : vector<27x32xf32>, vector<32x256xf32>, vector<27x256xf32> -> vector<27x256xf32>
    %c0_14 = arith.constant 0 : index
    %c0_15 = arith.constant 0 : index
    %19 = vector.load %arg5[%c0_14, %c0_15] : memref<27x256xf32, #tpu.memory_space<vmem>>, vector<27x256xf32>
    %cst_16 = arith.constant 0.000000e+00 : f32
    %20 = vector.broadcast %cst_16 : f32 to vector<27x73xf32>
    %21 = tpu.concatenate %20, %18, %20 in 1 : vector<27x73xf32>, vector<27x256xf32>, vector<27x73xf32> -> vector<27x402xf32>
    %22 = vector.extract_strided_slice %18 {offsets = [13, 0], sizes = [1, 256], strides = [1, 1]} : vector<27x256xf32> to vector<1x256xf32>
    %23 = vector.extract_strided_slice %21 {offsets = [0, 0], sizes = [1, 256], strides = [1, 1]} : vector<27x402xf32> to vector<1x256xf32>
    %24 = vector.extract_strided_slice %19 {offsets = [0, 0], sizes = [1, 256], strides = [1, 1]} : vector<27x256xf32> to vector<1x256xf32>
    %25 = arith.mulf %23, %24 : vector<1x256xf32>
    %26 = arith.addf %22, %25 : vector<1x256xf32>
    %27 = vector.extract_strided_slice %21 {offsets = [1, 1], sizes = [1, 256], strides = [1, 1]} : vector<27x402xf32> to vector<1x256xf32>
    %28 = vector.extract_strided_slice %19 {offsets = [1, 0], sizes = [1, 256], strides = [1, 1]} : vector<27x256xf32> to vector<1x256xf32>
    %29 = arith.mulf %27, %28 : vector<1x256xf32>
    %30 = arith.addf %26, %29 : vector<1x256xf32>
    %31 = vector.extract_strided_slice %21 {offsets = [2, 2], sizes = [1, 256], strides = [1, 1]} : vector<27x402xf32> to vector<1x256xf32>
    %32 = vector.extract_strided_slice %19 {offsets = [2, 0], sizes = [1, 256], strides = [1, 1]} : vector<27x256xf32> to vector<1x256xf32>
    %33 = arith.mulf %31, %32 : vector<1x256xf32>
    %34 = arith.addf %30, %33 : vector<1x256xf32>
    %35 = vector.extract_strided_slice %21 {offsets = [3, 8], sizes = [1, 256], strides = [1, 1]} : vector<27x402xf32> to vector<1x256xf32>
    %36 = vector.extract_strided_slice %19 {offsets = [3, 0], sizes = [1, 256], strides = [1, 1]} : vector<27x256xf32> to vector<1x256xf32>
    %37 = arith.mulf %35, %36 : vector<1x256xf32>
    %38 = arith.addf %34, %37 : vector<1x256xf32>
    %39 = vector.extract_strided_slice %21 {offsets = [4, 9], sizes = [1, 256], strides = [1, 1]} : vector<27x402xf32> to vector<1x256xf32>
    %40 = vector.extract_strided_slice %19 {offsets = [4, 0], sizes = [1, 256], strides = [1, 1]} : vector<27x256xf32> to vector<1x256xf32>
    %41 = arith.mulf %39, %40 : vector<1x256xf32>
    %42 = arith.addf %38, %41 : vector<1x256xf32>
    %43 = vector.extract_strided_slice %21 {offsets = [5, 10], sizes = [1, 256], strides = [1, 1]} : vector<27x402xf32> to vector<1x256xf32>
    %44 = vector.extract_strided_slice %19 {offsets = [5, 0], sizes = [1, 256], strides = [1, 1]} : vector<27x256xf32> to vector<1x256xf32>
    %45 = arith.mulf %43, %44 : vector<1x256xf32>
    %46 = arith.addf %42, %45 : vector<1x256xf32>
    %47 = vector.extract_strided_slice %21 {offsets = [6, 16], sizes = [1, 256], strides = [1, 1]} : vector<27x402xf32> to vector<1x256xf32>
    %48 = vector.extract_strided_slice %19 {offsets = [6, 0], sizes = [1, 256], strides = [1, 1]} : vector<27x256xf32> to vector<1x256xf32>
    %49 = arith.mulf %47, %48 : vector<1x256xf32>
    %50 = arith.addf %46, %49 : vector<1x256xf32>
    %51 = vector.extract_strided_slice %21 {offsets = [7, 17], sizes = [1, 256], strides = [1, 1]} : vector<27x402xf32> to vector<1x256xf32>
    %52 = vector.extract_strided_slice %19 {offsets = [7, 0], sizes = [1, 256], strides = [1, 1]} : vector<27x256xf32> to vector<1x256xf32>
    %53 = arith.mulf %51, %52 : vector<1x256xf32>
    %54 = arith.addf %50, %53 : vector<1x256xf32>
    %55 = vector.extract_strided_slice %21 {offsets = [8, 18], sizes = [1, 256], strides = [1, 1]} : vector<27x402xf32> to vector<1x256xf32>
    %56 = vector.extract_strided_slice %19 {offsets = [8, 0], sizes = [1, 256], strides = [1, 1]} : vector<27x256xf32> to vector<1x256xf32>
    %57 = arith.mulf %55, %56 : vector<1x256xf32>
    %58 = arith.addf %54, %57 : vector<1x256xf32>
    %59 = vector.extract_strided_slice %21 {offsets = [9, 64], sizes = [1, 256], strides = [1, 1]} : vector<27x402xf32> to vector<1x256xf32>
    %60 = vector.extract_strided_slice %19 {offsets = [9, 0], sizes = [1, 256], strides = [1, 1]} : vector<27x256xf32> to vector<1x256xf32>
    %61 = arith.mulf %59, %60 : vector<1x256xf32>
    %62 = arith.addf %58, %61 : vector<1x256xf32>
    %63 = vector.extract_strided_slice %21 {offsets = [10, 65], sizes = [1, 256], strides = [1, 1]} : vector<27x402xf32> to vector<1x256xf32>
    %64 = vector.extract_strided_slice %19 {offsets = [10, 0], sizes = [1, 256], strides = [1, 1]} : vector<27x256xf32> to vector<1x256xf32>
    %65 = arith.mulf %63, %64 : vector<1x256xf32>
    %66 = arith.addf %62, %65 : vector<1x256xf32>
    %67 = vector.extract_strided_slice %21 {offsets = [11, 66], sizes = [1, 256], strides = [1, 1]} : vector<27x402xf32> to vector<1x256xf32>
    %68 = vector.extract_strided_slice %19 {offsets = [11, 0], sizes = [1, 256], strides = [1, 1]} : vector<27x256xf32> to vector<1x256xf32>
    %69 = arith.mulf %67, %68 : vector<1x256xf32>
    %70 = arith.addf %66, %69 : vector<1x256xf32>
    %71 = vector.extract_strided_slice %21 {offsets = [12, 72], sizes = [1, 256], strides = [1, 1]} : vector<27x402xf32> to vector<1x256xf32>
    %72 = vector.extract_strided_slice %19 {offsets = [12, 0], sizes = [1, 256], strides = [1, 1]} : vector<27x256xf32> to vector<1x256xf32>
    %73 = arith.mulf %71, %72 : vector<1x256xf32>
    %74 = arith.addf %70, %73 : vector<1x256xf32>
    %75 = vector.extract_strided_slice %21 {offsets = [14, 74], sizes = [1, 256], strides = [1, 1]} : vector<27x402xf32> to vector<1x256xf32>
    %76 = vector.extract_strided_slice %19 {offsets = [14, 0], sizes = [1, 256], strides = [1, 1]} : vector<27x256xf32> to vector<1x256xf32>
    %77 = arith.mulf %75, %76 : vector<1x256xf32>
    %78 = arith.addf %74, %77 : vector<1x256xf32>
    %79 = vector.extract_strided_slice %21 {offsets = [15, 80], sizes = [1, 256], strides = [1, 1]} : vector<27x402xf32> to vector<1x256xf32>
    %80 = vector.extract_strided_slice %19 {offsets = [15, 0], sizes = [1, 256], strides = [1, 1]} : vector<27x256xf32> to vector<1x256xf32>
    %81 = arith.mulf %79, %80 : vector<1x256xf32>
    %82 = arith.addf %78, %81 : vector<1x256xf32>
    %83 = vector.extract_strided_slice %21 {offsets = [16, 81], sizes = [1, 256], strides = [1, 1]} : vector<27x402xf32> to vector<1x256xf32>
    %84 = vector.extract_strided_slice %19 {offsets = [16, 0], sizes = [1, 256], strides = [1, 1]} : vector<27x256xf32> to vector<1x256xf32>
    %85 = arith.mulf %83, %84 : vector<1x256xf32>
    %86 = arith.addf %82, %85 : vector<1x256xf32>
    %87 = vector.extract_strided_slice %21 {offsets = [17, 82], sizes = [1, 256], strides = [1, 1]} : vector<27x402xf32> to vector<1x256xf32>
    %88 = vector.extract_strided_slice %19 {offsets = [17, 0], sizes = [1, 256], strides = [1, 1]} : vector<27x256xf32> to vector<1x256xf32>
    %89 = arith.mulf %87, %88 : vector<1x256xf32>
    %90 = arith.addf %86, %89 : vector<1x256xf32>
    %91 = vector.extract_strided_slice %21 {offsets = [18, 128], sizes = [1, 256], strides = [1, 1]} : vector<27x402xf32> to vector<1x256xf32>
    %92 = vector.extract_strided_slice %19 {offsets = [18, 0], sizes = [1, 256], strides = [1, 1]} : vector<27x256xf32> to vector<1x256xf32>
    %93 = arith.mulf %91, %92 : vector<1x256xf32>
    %94 = arith.addf %90, %93 : vector<1x256xf32>
    %95 = vector.extract_strided_slice %21 {offsets = [19, 129], sizes = [1, 256], strides = [1, 1]} : vector<27x402xf32> to vector<1x256xf32>
    %96 = vector.extract_strided_slice %19 {offsets = [19, 0], sizes = [1, 256], strides = [1, 1]} : vector<27x256xf32> to vector<1x256xf32>
    %97 = arith.mulf %95, %96 : vector<1x256xf32>
    %98 = arith.addf %94, %97 : vector<1x256xf32>
    %99 = vector.extract_strided_slice %21 {offsets = [20, 130], sizes = [1, 256], strides = [1, 1]} : vector<27x402xf32> to vector<1x256xf32>
    %100 = vector.extract_strided_slice %19 {offsets = [20, 0], sizes = [1, 256], strides = [1, 1]} : vector<27x256xf32> to vector<1x256xf32>
    %101 = arith.mulf %99, %100 : vector<1x256xf32>
    %102 = arith.addf %98, %101 : vector<1x256xf32>
    %103 = vector.extract_strided_slice %21 {offsets = [21, 136], sizes = [1, 256], strides = [1, 1]} : vector<27x402xf32> to vector<1x256xf32>
    %104 = vector.extract_strided_slice %19 {offsets = [21, 0], sizes = [1, 256], strides = [1, 1]} : vector<27x256xf32> to vector<1x256xf32>
    %105 = arith.mulf %103, %104 : vector<1x256xf32>
    %106 = arith.addf %102, %105 : vector<1x256xf32>
    %107 = vector.extract_strided_slice %21 {offsets = [22, 137], sizes = [1, 256], strides = [1, 1]} : vector<27x402xf32> to vector<1x256xf32>
    %108 = vector.extract_strided_slice %19 {offsets = [22, 0], sizes = [1, 256], strides = [1, 1]} : vector<27x256xf32> to vector<1x256xf32>
    %109 = arith.mulf %107, %108 : vector<1x256xf32>
    %110 = arith.addf %106, %109 : vector<1x256xf32>
    %111 = vector.extract_strided_slice %21 {offsets = [23, 138], sizes = [1, 256], strides = [1, 1]} : vector<27x402xf32> to vector<1x256xf32>
    %112 = vector.extract_strided_slice %19 {offsets = [23, 0], sizes = [1, 256], strides = [1, 1]} : vector<27x256xf32> to vector<1x256xf32>
    %113 = arith.mulf %111, %112 : vector<1x256xf32>
    %114 = arith.addf %110, %113 : vector<1x256xf32>
    %115 = vector.extract_strided_slice %21 {offsets = [24, 144], sizes = [1, 256], strides = [1, 1]} : vector<27x402xf32> to vector<1x256xf32>
    %116 = vector.extract_strided_slice %19 {offsets = [24, 0], sizes = [1, 256], strides = [1, 1]} : vector<27x256xf32> to vector<1x256xf32>
    %117 = arith.mulf %115, %116 : vector<1x256xf32>
    %118 = arith.addf %114, %117 : vector<1x256xf32>
    %119 = vector.extract_strided_slice %21 {offsets = [25, 145], sizes = [1, 256], strides = [1, 1]} : vector<27x402xf32> to vector<1x256xf32>
    %120 = vector.extract_strided_slice %19 {offsets = [25, 0], sizes = [1, 256], strides = [1, 1]} : vector<27x256xf32> to vector<1x256xf32>
    %121 = arith.mulf %119, %120 : vector<1x256xf32>
    %122 = arith.addf %118, %121 : vector<1x256xf32>
    %123 = vector.extract_strided_slice %21 {offsets = [26, 146], sizes = [1, 256], strides = [1, 1]} : vector<27x402xf32> to vector<1x256xf32>
    %124 = vector.extract_strided_slice %19 {offsets = [26, 0], sizes = [1, 256], strides = [1, 1]} : vector<27x256xf32> to vector<1x256xf32>
    %125 = arith.mulf %123, %124 : vector<1x256xf32>
    %126 = arith.addf %122, %125 : vector<1x256xf32>
    %127 = arith.negf %126 : vector<1x256xf32>
    %128 = math.exp %127 : vector<1x256xf32>
    %cst_17 = arith.constant 1.000000e+00 : f32
    %129 = vector.broadcast %cst_17 : f32 to vector<1x256xf32>
    %130 = arith.addf %129, %128 : vector<1x256xf32>
    %131 = arith.divf %129, %130 : vector<1x256xf32>
    %132 = vector.broadcast %131 : vector<1x256xf32> to vector<32x256xf32>
    %133 = arith.mulf %1, %132 : vector<32x256xf32>
    %134 = vector.broadcast %16 : vector<32x1xf32> to vector<32x256xf32>
    %135 = arith.mulf %133, %134 : vector<32x256xf32>
    %c0_18 = arith.constant 0 : index
    %c0_19 = arith.constant 0 : index
    %c0_20 = arith.constant 0 : index
    %136 = vector.load %arg6[%c0_18, %c0_19, %c0_20] : memref<1x32x256xf32, #tpu.memory_space<vmem>>, vector<1x32x256xf32>
    %137 = vector.shape_cast %136 : vector<1x32x256xf32> to vector<32x256xf32>
    %138 = vector.shape_cast %135 : vector<32x256xf32> to vector<1x32x256xf32>
    tpu.vector_store %arg6[%c0_18, %c0_19, %c0_20], %138 {strides = array<i32>} : memref<1x32x256xf32, #tpu.memory_space<vmem>>, vector<1x32x256xf32>,
    return
  }
  func.func @transform_0(%arg0: i32) -> (i32, i32, i32) {
    %c0_i32 = arith.constant 0 : i32
    %c0_i32_0 = arith.constant 0 : i32
    %c0_i32_1 = arith.constant 0 : i32
    return %arg0, %c0_i32, %c0_i32_0 : i32, i32, i32
  }
  func.func @transform_1(%arg0: i32) -> (i32, i32) {
    %c0_i32 = arith.constant 0 : i32
    %c0_i32_0 = arith.constant 0 : i32
    %c0_i32_1 = arith.constant 0 : i32
    return %c0_i32, %c0_i32_0 : i32, i32
  }
  func.func @transform_2(%arg0: i32) -> (i32, i32) {
    %c0_i32 = arith.constant 0 : i32
    %c0_i32_0 = arith.constant 0 : i32
    %c0_i32_1 = arith.constant 0 : i32
    return %c0_i32, %c0_i32_0 : i32, i32
  }
  func.func @transform_3(%arg0: i32) -> (i32, i32) {
    %c0_i32 = arith.constant 0 : i32
    %c0_i32_0 = arith.constant 0 : i32
    %c0_i32_1 = arith.constant 0 : i32
    return %c0_i32, %c0_i32_0 : i32, i32
  }
  func.func @transform_4(%arg0: i32) -> (i32, i32) {
    %c0_i32 = arith.constant 0 : i32
    %c0_i32_0 = arith.constant 0 : i32
    %c0_i32_1 = arith.constant 0 : i32
    return %c0_i32, %c0_i32_0 : i32, i32
  }
  func.func @transform_5(%arg0: i32) -> (i32, i32, i32) {
    %c0_i32 = arith.constant 0 : i32
    %c0_i32_0 = arith.constant 0 : i32
    %c0_i32_1 = arith.constant 0 : i32
    return %arg0, %c0_i32, %c0_i32_0 : i32, i32, i32
  }
}

</mosaic_0001>

<bundles_post_ra>
// kernel: tpu_custom_call.1
= control target key start
LH: loop header
LB: loop body
LE: loop exit
PB: predicated region body
PF: predicated region fallthrough
CT: control target
= control target key end

     0   :  { %10 = vsyncpa [#allocation3], 0  ;;  %s2772_s0 = inlined_call_operand.hbm [shape: f32[2,32,256], index: 0, kind: input, shape index: {}]   ;;  %s2773_s1 = inlined_call_operand.vmem [shape: f32[2,32], index: 1, kind: input, shape index: {}]   ;;  %s2774_s2 = inlined_call_operand.vmem [shape: f32[32,2], index: 2, kind: input, shape index: {}]   ;;  %s2775_s3 = inlined_call_operand.vmem [shape: f32[27,32], index: 3, kind: input, shape index: {}]   ;;  %s2776_s4 = inlined_call_operand.hbm [shape: f32[27,256], index: 4, kind: input, shape index: {}]   ;;  %s2777_s5 = inlined_call_operand.hbm [shape: f32[2,32,256], index: 5, kind: output, shape index: {}]  }
   0x1   :  { %12 = vsyncpa [#allocation3 + $0x1], 0 }
   0x2   :  { %13 = vsyncpa [#allocation6], 0 }
   0x3   :  { %14 = vsyncpa [#allocation4], 0 }
   0x4   :  { %16 = vsyncpa [#allocation4 + $0x1], 0  ;;  %s1972_s18 = smov 0   ;;  %s1974_s19 = smov 0  }
   0x5   :  { %s1976_s20 = smov 0   ;;  %s1978_s21 = smov 0  }
   0x6 LB: > { %s1993_s22 = sadd.s32 4294967295, %s1898_s21   ;;  %s1557_s23 = sadd.s32 4294967294, %s1898_s21   ;;  %s1898_s21 = sphi %s1978_s21, %s2836_s21   ;;  %s1894_s20 = sphi %s1976_s20, %s2835_s20   ;;  %s1890_s19 = sphi %s1974_s19, %s2834_s19   ;;  %s1886_s18 = sphi %s1972_s18, %s2833_s18  }
   0x7   : > { %p42_p0 = scmp.ne.s32.totalorder %s1890_s19, %s1886_s18  ;;  %p2778_p1 = scmp.eq.s32.totalorder %s1993_s22, 0 }
   0x8   : > { %p156_p3 = scmp.eq.s32.totalorder %s1557_s23, 1  ;;  %p1558_p5 = scmp.ge.s32.totalorder %s1898_s21, 1 }
   0x9   : > { %p2002_p4 = por %p2778_p1, %p42_p0  ;;  %p163_p7 = scmp.lt.s32.totalorder %s1898_s21, 3 }
   0xa   : > { %p2007_p6 = por %p156_p3, %p42_p0  ;;  %s1900_s27 = smov [#allocation5]  }
   0xb   : > { %s2792_s24 = scalar_select %p2002_p4, 1, 0 }
   0xc   : > { %s2793_s25 = scalar_select %p2007_p6, 1, 0 }
   0xd   : > { %p2012_p8 = pnand %p1558_p5, %p163_p7  ;;  %s184_s28 = sshll.u32 %s1900_s27, 4  ;;  %s2016_s28 = int_to_ptr.vmem [resolvable:$true] %s184_s28 }
   0xe   : > { %s2028_s30 = sadd.s32 1, %s1898_s21   ;;  %s29_s6 = sadd.s32 1, %s1894_s20 }
   0xf   : > { %s2794_s26 = scalar_select %p2012_p8, 1, 0 }
  0x10   : > { %p1646_p9 = pneg %p2012_p8  ;;  %s26_s7 = ssub.s32 %s1898_s21, %s2028_s30 }
  0x11   : > { %s1770_s10 = scalar_lea.hbm %s2776_s4, 1024 }
  0x12   : > { %p2023_p11 = pnand %p1646_p9, %p2778_p1  ;;  %p1771_p12 = scmp.ne.s32.totalorder %s2776_s4, %s1770_s10 }
  0x13   : > { %p1777_p5 = scmp.lt.u32.totalorder %s1770_s10, %s2776_s4 }
  0x14   : > { %p1772_p13 = pneg %p2023_p11 }
  0x16   : > { %p1773_p0 = pnand %p1772_p13, %p1771_p12 }
  0x18   : > { %p1774_p3 = pneg %p1773_p0 }
  0x1a   : > { %p1779_p7 = pnand %p1777_p5, %p1774_p3 }
  0x1c   : > { %1782 = shalt.err (!%p1779_p7)
}
  0x1d   : > { %s1783_s15 = scalar_lea.vmem %s2016_s28, 1024  ;;  %p1791_p2 = scmp.lt.s32.totalorder %s2016_s28, %s2016_s28 }
  0x1e   : > { %p1784_p9 = scmp.ne.s32.totalorder %s2016_s28, %s1783_s15  ;;  %p1792_p6 = scmp.lt.s32.totalorder %s1783_s15, %s1783_s15 }
  0x20   : > { %p1786_p10 = pnand %p1784_p9, %p1772_p13  ;;  %p1793_p4 = por %p1792_p6, %p1791_p2 }
  0x22   : > { %p1787_p1 = pneg %p1786_p10 }
  0x24   : > { %p1794_p8 = pnand %p1793_p4, %p1787_p1 }
  0x26   : > { %1797 = shalt.err (!%p1794_p8)
}
  0x27   : > { %s1901_s16 = smov 256   ;;  %s1902_s17 = smov 16  }
  0x28   : > { %1649 = dma.hbm_to_vmem [thread:$0]  (!%p2023_p11), %s2776_s4, 1024, %s2016_s28, [#allocation6], %s1901_s16, %s1901_s16, %s1902_s17  }
  0x29   : > { %p27_p1 = scmp.eq.s32.totalorder %s26_s7, 0  ;;  %p36_p2 = scmp.ne.s32.totalorder %s1894_s20, %s1890_s19 }
  0x2a   : > { %p37_p4 = scmp.eq.s32.totalorder %s1898_s21, 0  ;;  %p1659_p6 = scmp.lt.s32.totalorder %s1898_s21, 2 }
  0x2b   : > { %s2062_s8 = scalar_select %p27_p1, %s1894_s20, %s29_s6  }
  0x2c   : > { %p38_p8 = por %p37_p4, %p36_p2  ;;  %p2796_p10 = scmp.eq.s32.totalorder %s1993_s22, 1 }
  0x2d   : > { %s198_s29 = sand.u32 1, %s1894_s20   ;;  %s1589_s10 = sshll.u32 %s1898_s21, 10 }
  0x2e   : > { %p2066_p12 = por %p2796_p10, %p36_p2  ;;  %s1561_s11 = sshll.u32 %s198_s29, 6 }
  0x2f   : > { %s2075_s14 = scalar_lea.hbm %s2772_s0, %s1589_s10  ;;  %s202_s28 = scalar_lea.vmem [#allocation2], %s1561_s11 }
  0x30   : > { %s209_s6 = sshll.u32 %s202_s28, 4  ;;  %p2077_p11 = pnand %p1659_p6, %p38_p8  ;;  %s2081_s6 = int_to_ptr.vmem [resolvable:$true] %s209_s6 }
  0x31   : > { %s2083_s15 = scalar_lea.sflag [#allocation3], %s198_s29  ;;  %s1798_s23 = scalar_lea.hbm %s2075_s14, 1024 }
  0x32   : > { %p1799_p13 = scmp.ne.s32.totalorder %s2075_s14, %s1798_s23  ;;  %p1800_p0 = pneg %p2077_p11 }
  0x33   : > { %s1803_s11 = scalar_lea.hbm %s2772_s0, 2048  ;;  %p1804_p7 = scmp.lt.u32.totalorder %s2075_s14, %s2772_s0 }
  0x34   : > { %p1801_p3 = pnand %p1800_p0, %p1799_p13  ;;  %p1805_p9 = scmp.lt.u32.totalorder %s1803_s11, %s1798_s23 }
  0x35   : > { %p1807_p2 = scmp.lt.u32.totalorder %s1798_s23, %s2075_s14 }
  0x36   : > { %p1802_p5 = pneg %p1801_p3  ;;  %p1806_p1 = por %p1805_p9, %p1804_p7 }
  0x38   : > { %p1808_p4 = por %p1807_p2, %p1806_p1 }
  0x3a   : > { %p1809_p6 = pnand %p1808_p4, %p1802_p5 }
  0x3c   : > { %1812 = shalt.err (!%p1809_p6)
}
  0x3d   : > { %s1813_s29 = scalar_lea.vmem %s2081_s6, 1024  ;;  %s1903_s28 = smov [#allocation2]  }
  0x3e   : > { %p1814_p8 = scmp.ne.s32.totalorder %s2081_s6, %s1813_s29  ;;  %s1818_s27 = sshll.u32 %s1903_s28, 4  ;;  %s1819_s27 = int_to_ptr.vmem [resolvable:$false] %s1818_s27 }
  0x3f   : > { %s1820_s10 = scalar_lea.vmem %s1819_s27, 2048  ;;  %p1821_p3 = scmp.lt.s32.totalorder %s2081_s6, %s1819_s27 }
  0x40   : > { %p1816_p10 = pnand %p1814_p8, %p1800_p0  ;;  %p1822_p7 = scmp.lt.s32.totalorder %s1820_s10, %s1813_s29 }
  0x42   : > { %p1817_p13 = pneg %p1816_p10  ;;  %p1823_p9 = por %p1822_p7, %p1821_p3 }
  0x44   : > { %p1824_p1 = pnand %p1823_p9, %p1817_p13 }
  0x46   : > { %1827 = shalt.err (!%p1824_p1)
}
  0x47   : > { %1653 = dma.hbm_to_vmem [thread:$0]  (!%p2077_p11), %s2075_s14, 1024, %s2081_s6, %s2083_s15, %s1901_s16, %s1901_s16, %s1902_s17  }
  0x48   : > { %p2799_p0 = scmp.ne.s32.totalorder %s2794_s26, 0 }
  0x4a   : > { %221 = sbr.rel (%p2799_p0) target bundleno = 1059 (0x423), region = 40 }
  0x51   : > { %s2117_s23 = sand.u32 1, %s1890_s19   ;;  %p2800_p5 = scmp.ne.s32.totalorder %s2792_s24, 0 }
  0x52   : > { %s2781_s11 = sshll.u32 %s2117_s23, 6  ;;  %s224_s12 = scalar_lea.sflag [#allocation3], %s2117_s23 }
  0x53   : > { %s2123_s7 = scalar_lea.vmem [#allocation2], %s2781_s11 }
  0x54   : > { %1873 = dma.done.wait (%p2800_p5), %s224_s12, 1024  }
  0x55   : > { %1875 = vsyncadd (%p2800_p5), %s224_s12, 4294966272  ;;  %p2801_p11 = scmp.eq.s32.totalorder %s1993_s22, 0 }
  0x57   : > { %1877 = dma.done.wait (%p2801_p11), [#allocation6], 1024   ;;  %p2802_p2 = pmov %p2801_p11 }
  0x58   : > { %v2134_v0 = vld [vmem:[%s2123_s7 + $0x20] sm:$0xff]  ;;  %v2137_v1 = vld [vmem:[%s2123_s7 + $0x28] sm:$0xff]  ;;  %v2148_v5 = vld [vmem:[%s2123_s7 + $0x30] sm:$0xff]  ;;  %v1904_v12 = vmov 0.0|0.0   ;;  %vm1905_vm0 = vmmov 0   ;;  %v1906_v13 = vmov 0.0  }
  0x59   : > { %1879 = vsyncadd (%p2802_p2), [#allocation6], 4294966272  ;;  %v2140_v2 = vld [vmem:[%s2123_s7] sm:$0xff]  ;;  %v272_v3 = vadd.f32 %v2137_v1, %v2134_v0  ;;  %v2145_v4 = vld [vmem:[%s2123_s7 + $0x8] sm:$0xff]  ;;  %1620 = vmatprep.subr.bf16.mxu0 %v1904_v12  ;;  %1609 = vmatprep.mubr.msk.f32.mxu0 %vm1905_vm0, %v1906_v13  ;;  %s1907_s24 = smov 1   ;;  %s1908_s26 = smov 2   ;;  %v2243_v38 = vpack.c.bf16 %v2148_v5, %v2134_v0 }
  0x5a   : > { %v2151_v6 = vld [vmem:[%s2123_s7 + $0x38] sm:$0xff]  ;;  %v266_v7 = vadd.f32 %v2145_v4, %v2140_v2  ;;  %v2156_v8 = vld [vmem:[%s2123_s7 + $0x10] sm:$0xff]  ;;  %v2167_v14 = vld [vmem:[#allocation5] sm:$0xff]  ;;  %s1909_s16 = smov 8   ;;  %s1910_s17 = smov 9   ;;  %vm283_vm1 = vcmask 261120  }
  0x5b   : > { %v2159_v9 = vld [vmem:[%s2123_s7 + $0x18] sm:$0xff]  ;;  %273 = vadd.xlane.f32.xlu1 %v272_v3  ;;  %v275_v10 = vadd.f32 %v2151_v6, %v2148_v5  ;;  %v2169_v15 = vld [vmem:[#allocation5 + $0x8] sm:$0xff]  ;;  %s1911_s14 = smov 10   ;;  %s2788_s6 = smov 16   ;;  %v595_v17 = vld [vmem:[#allocation5 + $0x10] sm:$0xff]  ;;  %v2228_v34 = vpack.c.bf16 %v2156_v8, %v2140_v2  ;;  %v2236_v36 = vpack.c.bf16 %v2151_v6, %v2137_v1  ;;  %vm362_vm2 = vcmask 15360  }
  0x5c   : > { %267 = vadd.xlane.f32.xlu0 %v266_v7  ;;  %v269_v11 = vadd.f32 %v2159_v9, %v2156_v8  ;;  %s1913_s15 = smov 17   ;;  %v596_v16 = vld [vmem:[#allocation5 + $0x18] sm:$0xff]  ;;  %s2782_s13 = smov 18   ;;  %v598_v18 = vld [vmem:[#allocation5 + $0x28] sm:$0xff]  ;;  %v597_v19 = vld [vmem:[#allocation5 + $0x20] sm:$0xff]  ;;  %v2222_v31 = vpack.c.bf16 %v2159_v9, %v2145_v4  ;;  %vm375_vm3 = vcmask 1041408  }
  0x5d   : > { %s2784_s29 = smov 64   ;;  %s1916_s28 = smov 65   ;;  %v600_v20 = vld [vmem:[#allocation5 + $0x38] sm:$0x7]  ;;  %v599_v21 = vld [vmem:[#allocation5 + $0x30] sm:$0x7] }
  0x5e   : > { %s1917_s27 = smov 66   ;;  %s1918_s10 = smov 72   ;;  %v282_v35 = vld [vmem:[%s2773_s1] sm:$0x3]  ;;  %vm625_vm4 = vcmask 596992   ;;  %vm787_vm5 = vcmask 80896  }
  0x5f   : > { %276 = vadd.xlane.f32.xlu1 %v275_v10  ;;  %s1919_s12 = smov 74   ;;  %s1920_s11 = smov 80   ;;  %v488_v40 = vld [vmem:[%s2775_s3] sm:$0xff]  ;;  %vm664_vm6 = vcmask 7168   ;;  %vm725_vm7 = vcmask 64512   ;;  %vm756_vm8 = vcmask 72704  }
  0x60   : > { %270 = vadd.xlane.f32.xlu0 %v269_v11  ;;  %v358_v10 = vld [vmem:[%s2774_s2] sm:$0xff]  ;;  %vm815_vm9 = vcmask 130048   ;;  %vm846_vm10 = vcmask 138240   ;;  %vm2789_vm11 = vcmask 965632   ;;  %vm684_vm12 = vcmask 1039360  }
  0x61   : > { %1614 = vmatprep.mubr.msk.f32.mxu1 %vm362_vm2, %v358_v10  ;;  %vm714_vm13 = vcmask 1031168   ;;  %vm2791_vm14 = vcmask 982016   ;;  %vm2790_vm15 = vcmask 973824   ;;  %vm2787_vm0 = vcmask 916480  }
  0x70   : > { %662 = vrot.lane.b32.xlu1 %v2169_v15, %s1907_s24 }
  0x74   : > { %691 = vrot.lane.b32.xlu1 %v2167_v14, %s1908_s26 }
  0x76   : > { %660 = vrot.lane.b32.xlu0 %v2167_v14, %s1907_s24 }
  0x78   : > { %723 = vrot.lane.b32.xlu1 %v2169_v15, %s1909_s16 }
  0x7a   : > { %693 = vrot.lane.b32.xlu0 %v2169_v15, %s1908_s26 }
  0x7c   : > { %752 = vrot.lane.b32.xlu1 %v2167_v14, %s1910_s17 }
  0x7e   : > { %721 = vrot.lane.b32.xlu0 %v2167_v14, %s1909_s16 }
  0x80   : > { %785 = vrot.lane.b32.xlu1 %v2169_v15, %s1911_s14 }
  0x82   : > { %754 = vrot.lane.b32.xlu0 %v2169_v15, %s1910_s17 }
  0x84   : > { %811 = vrot.lane.b32.xlu1 %v2167_v14, %s2788_s6 }
  0x86   : > { %783 = vrot.lane.b32.xlu0 %v2167_v14, %s1911_s14 }
  0x88   : > { %844 = vrot.lane.b32.xlu1 %v2169_v15, %s1913_s15 }
  0x8a   : > { %813 = vrot.lane.b32.xlu0 %v2169_v15, %s2788_s6 }
  0x8c   : > { %875 = vrot.lane.b32.xlu1 %v595_v17, %s2782_s13 }
  0x8e   : > { %842 = vrot.lane.b32.xlu0 %v2167_v14, %s1913_s15 }
  0x90   : > { %906 = vrot.lane.b32.xlu1 %v595_v17, %s2784_s29 }
  0x92   : > { %877 = vrot.lane.b32.xlu0 %v596_v16, %s2782_s13  ;;  %s1921_s13 = smov 81  }
  0x94   : > { %936 = vrot.lane.b32.xlu1 %v595_v17, %s1916_s28 }
  0x96   : > { %908 = vrot.lane.b32.xlu0 %v596_v16, %s2784_s29  ;;  %s1922_s29 = smov 82  }
  0x98   : > { %967 = vrot.lane.b32.xlu1 %v595_v17, %s1917_s27 }
  0x9a   : > { %938 = vrot.lane.b32.xlu0 %v596_v16, %s1916_s28  ;;  %s1927_s28 = smov 119  }
  0x9c   : > { %998 = vrot.lane.b32.xlu1 %v595_v17, %s1918_s10 }
  0x9e   : > { %969 = vrot.lane.b32.xlu0 %v596_v16, %s1917_s27  ;;  %s1934_s27 = smov 63  }
  0xa0   : > { %1029 = vrot.lane.b32.xlu1 %v595_v17, %s1919_s12 }
  0xa2   : > { %1000 = vrot.lane.b32.xlu0 %v596_v16, %s1918_s10  ;;  %s1935_s10 = smov 54  }
  0xa4   : > { %1060 = vrot.lane.b32.xlu1 %v595_v17, %s1920_s11 }
  0xa6   : > { %1031 = vrot.lane.b32.xlu0 %v596_v16, %s1919_s12  ;;  %s1928_s12 = smov 111  }
  0xa8   : > { %1093 = vrot.lane.b32.xlu1 %v597_v19, %s1921_s13 }
  0xaa   : > { %1062 = vrot.lane.b32.xlu0 %v596_v16, %s1920_s11  ;;  %s2803_s11 = smov 18  }
  0xac   : > { %1124 = vrot.lane.b32.xlu1 %v597_v19, %s1922_s29 }
  0xae   : > { %1095 = vrot.lane.b32.xlu0 %v598_v18, %s1921_s13  ;;  %s1925_s13 = smov 127  }
  0xb0   : > { %1165 = vrot.lane.b32.xlu1 %v597_v19, %s1907_s24 }
  0xb2   : > { %1126 = vrot.lane.b32.xlu0 %v598_v18, %s1922_s29  ;;  %s1926_s29 = smov 118  }
  0xb4   : > { %1194 = vrot.lane.b32.xlu1 %v597_v19, %s1908_s26 }
  0xb6   : > { %1167 = vrot.lane.b32.xlu0 %v598_v18, %s1907_s24  ;;  %s1930_s24 = smov 73  }
  0xb8   : > { %1223 = vrot.lane.b32.xlu1 %v597_v19, %s1909_s16 }
  0xba   : > { %1196 = vrot.lane.b32.xlu0 %v598_v18, %s1908_s26  ;;  %s1936_s26 = smov 56  }
  0xbc   : > { %1249 = vrot.lane.b32.xlu1 %v597_v19, %s1910_s17 }
  0xbe   : > { %1225 = vrot.lane.b32.xlu0 %v598_v18, %s1909_s16  ;;  %s1932_s16 = smov 110  }
  0xc0   : > { %1278 = vrot.lane.b32.xlu1 %v597_v19, %s1911_s14 }
  0xc2   : > { %1251 = vrot.lane.b32.xlu0 %v598_v18, %s1910_s17  ;;  %s1933_s17 = smov 62  }
  0xc4   : > { %1309 = vrot.lane.b32.xlu1 %v599_v21, %s2788_s6 }
  0xc6   : > { %1280 = vrot.lane.b32.xlu0 %v598_v18, %s1911_s14  ;;  %s1923_s14 = smov 126  }
  0xc8   : > { %1338 = vrot.lane.b32.xlu1 %v599_v21, %s1913_s15 }
  0xca   : > { %1311 = vrot.lane.b32.xlu0 %v600_v20, %s2788_s6  ;;  %s1937_s6 = smov 48  }
  0xcc   : > { %1367 = vrot.lane.b32.xlu1 %v599_v21, %s2803_s11 }
  0xce   : > { %1340 = vrot.lane.b32.xlu0 %v600_v20, %s1913_s15  ;;  %s1924_s15 = smov 120  }
  0xd2   : > { %1369 = vrot.lane.b32.xlu0 %v600_v20, %s2803_s11  ;;  %s1929_s11 = smov 112  }
  0xe8   : > { %v274_v22 = vpop.xlane.xlu1 %273 }
  0xe9   : > { %v268_v23 = vpop.xlane.xlu0 %267  ;;  %v280_v28 = vmul.f32 0.00390625, %v274_v22 }
  0xea   : > { %v278_v26 = vmul.f32 0.00390625, %v268_v23 }
  0xec   : > { %v277_v24 = vpop.xlane.xlu1 %276 }
  0xed   : > { %v271_v25 = vpop.xlane.xlu0 %270  ;;  %v281_v29 = vmul.f32 0.00390625, %v277_v24  ;;  %v359_v24 = vld [vmem:[%s2774_s2 + $0x8] sm:$0xff] }
  0xee   : > { %v279_v27 = vmul.f32 0.00390625, %v271_v25  ;;  %v360_v25 = vld [vmem:[%s2774_s2 + $0x10] sm:$0xff] }
  0xef   : > { %v1624_v32 = vpack.c.bf16 %v281_v29, %v280_v28 }
  0xf0   : > { %v1621_v30 = vpack.c.bf16 %v279_v27, %v278_v26  ;;  %v2313_v11 = vpop.permute.xlu1 %662  ;;  %v361_v27 = vld [vmem:[%s2774_s2 + $0x18] sm:$0xff] }
  0xf1   : > { %v2224_v33 = vpop.permute.xlu0 %660 }
  0xf2   : > { %1622 = vmatpush3.bf16.msra.mxu0 %v1621_v30  ;;  %v489_v30 = vld [vmem:[%s2775_s3 + $0x8] sm:$0xff] }
  0xf3   : > { %1623 = vmatprep.subr.bf16.mxu0 %v1904_v12 }
  0xf4   : > { %v2315_v12 = vpop.permute.xlu1 %691 }
  0xf5   : > { %v2238_v37 = vpop.permute.xlu0 %693 }
  0xf6   : > { %1625 = vmatpush3.bf16.msra.mxu0 %v1624_v32  ;;  %v490_v32 = vld [vmem:[%s2775_s3 + $0x10] sm:$0xff] }
  0xf7   : > { %1627 = vmatprep.subr.bf16.mxu0 %v2222_v31 }
  0xf8   : > { %v2317_v16 = vpop.permute.xlu1 %723 }
  0xf9   : > { %1610 = vmatmul.mubr.msk.f32.vlgmr.msra.gmra.mrb[0].mxu0 %vm283_vm1, %v282_v35  ;;  %v2248_v39 = vpop.permute.xlu0 %721  ;;  %v491_v35 = vld [vmem:[%s2775_s3 + $0x18] sm:$0x7] }
  0xfa   : > { %1629 = vmatpush1.bf16.msra.mxu0 %v2228_v34  ;;  %568 = vmatprep.mubr.f32.mxu0 %v1906_v13 }
  0xfb   : > { %1631 = vmatprep.subr.bf16.mxu0 %v2236_v36 }
  0xfc   : > { %v2319_v17 = vpop.permute.xlu1 %752 }
  0xfd   : > { %v2254_v41 = vpop.permute.xlu0 %754 }
  0xfe   : > { %1633 = vmatpush1.bf16.msra.mxu0 %v2243_v38 }
 0x100   : > { %v2321_v18 = vpop.permute.xlu1 %785 }
 0x101   : > { %1578 = vmatmul.mubr.msk.f32.vlgmr.msra.gmra.mrb[2].mxu0 %vm283_vm1, %v488_v40  ;;  %v2257_v42 = vpop.permute.xlu0 %783 }
 0x104   : > { %v2323_v19 = vpop.permute.xlu1 %811 }
 0x105   : > { %v2259_v43 = vpop.permute.xlu0 %813 }
 0x108   : > { %v2325_v20 = vpop.permute.xlu1 %844 }
 0x109   : > { %v2261_v44 = vpop.permute.xlu0 %842 }
 0x10c   : > { %v2335_v26 = vpop.permute.xlu1 %875 }
 0x10d   : > { %v2263_v45 = vpop.permute.xlu0 %877 }
 0x111   : > { %v2265_v46 = vpop.permute.xlu0 %908 }
 0x115   : > { %v2267_v47 = vpop.permute.xlu0 %938 }
 0x119   : > { %v2269_v48 = vpop.permute.xlu0 %969 }
 0x11d   : > { %v2271_v49 = vpop.permute.xlu0 %1000 }
 0x121   : > { %v2273_v50 = vpop.permute.xlu0 %1031 }
 0x125   : > { %v2275_v51 = vpop.permute.xlu0 %1062 }
 0x129   : > { %v2277_v52 = vpop.permute.xlu0 %1095 }
 0x12d   : > { %v2279_v53 = vpop.permute.xlu0 %1126 }
 0x131   : > { %v2281_v54 = vpop.permute.xlu0 %1167 }
 0x132   : > { %v1175_v57 = vmul.f32 0.0, %v2281_v54 }
 0x134   : > { %v1181_v61 = vrot.slane %v1175_v57, 6 }
 0x135   : > { %v2283_v55 = vpop.permute.xlu0 %1196 }
 0x136   : > { %v1204_v56 = vmul.f32 0.0, %v2283_v55 }
 0x138   : > { %v1210_v58 = vrot.slane %v1204_v56, 7 }
 0x139   : > { %v2287_v59 = vpop.permute.xlu0 %1225 }
 0x13a   : > { %v1233_v60 = vmul.f32 0.0, %v2287_v59  ;;  %1215 = vrot.lane.b32.xlu1 %v1210_v58, %s1923_s14 }
 0x13c   : > { %1241 = vrot.lane.b32.xlu0 %v1233_v60, %s1924_s15 }
 0x13d   : > { %v2292_v62 = vpop.permute.xlu0 %1251 }
 0x13e   : > { %v1259_v1 = vmul.f32 0.0, %v2292_v62 }
 0x140   : > { %1186 = vrot.lane.b32.xlu0 %v1181_v61, %s1925_s13  ;;  %v1265_v4 = vrot.slane %v1259_v1, 1 }
 0x141   : > { %v2295_v63 = vpop.permute.xlu0 %1280 }
 0x142   : > { %v1288_v0 = vmul.f32 0.0, %v2295_v63  ;;  %1270 = vrot.lane.b32.xlu1 %v1265_v4, %s1927_s28 }
 0x144   : > { %v1294_v3 = vrot.slane %v1288_v0, 2 }
 0x145   : > { %v2299_v2 = vpop.permute.xlu0 %1311 }
 0x146   : > { %v1319_v5 = vmul.f32 0.0, %v2299_v2  ;;  %1299 = vrot.lane.b32.xlu0 %v1294_v3, %s1926_s29 }
 0x148   : > { %v1325_v8 = vrot.slane %v1319_v5, 3 }
 0x149   : > { %v2302_v6 = vpop.permute.xlu0 %1340 }
 0x14a   : > { %v1348_v7 = vmul.f32 0.0, %v2302_v6  ;;  %1330 = vrot.lane.b32.xlu1 %v1325_v8, %s1929_s11 }
 0x14c   : > { %v1354_v9 = vrot.slane %v1348_v7, 4 }
 0x14d   : > { %v2390_v4 = vpop.permute.xlu0 %1369 }
 0x14e   : > { %1359 = vrot.lane.b32.xlu0 %v1354_v9, %s1928_s12 }
 0x1ae   : > { %v2394_v7 = vpop.permute.xlu0 %1241 }
 0x1af   : > { %2804 = vst [vmem:[#allocation11_spill] sm:$0xff] %v2394_v7 }
 0x1b2   : > { %v2398_v9 = vpop.permute.xlu0 %1186 }
 0x1b3   : > { %2805 = vst [vmem:[#allocation12_spill] sm:$0xff] %v2398_v9 }
 0x1cc   : > { %v353_v21 = vpop.f32.mrb[0].mxu0 }
 0x1cd   : > { %v357_v22 = vmax.f32 %v353_v21, 0.0  ;;  %v1611_v23 = vpop.f32.mrb[1].mxu0  ;;  %v2402_v21 = vpop.permute.xlu0 %1299 }
 0x1ce   : > { %2807 = vst [vmem:[#allocation14_spill] sm:$0xff] %v2402_v21 }
 0x1cf   : > { %1612 = vmatprep.subr.msk.mxu1 %vm375_vm3, %v357_v22 }
 0x1d0   : > { %1613 = vmatpush3.msk.msra.mxu1 %vm375_vm3, %v357_v22  ;;  %vm879_vm3 = vcmask 146432  }
 0x1d1   : > { %1615 = vmatmul.mubr.msk.f32.vlgmr.msra.gmra.mrb[0].mxu1 %vm362_vm2, %v359_v24  ;;  %1634 = vmatprep.subr.bf16.mxu1 %v2222_v31  ;;  %v2351_v31 = vpop.permute.xlu1 %906  ;;  %v2406_v23 = vpop.permute.xlu0 %1359 }
 0x1d2   : > { %1636 = vmatpush1.bf16.msra.mxu1 %v2228_v34  ;;  %1617 = vmatprep.mubr.msk.f32.mxu1 %vm362_vm2, %v360_v25  ;;  %2809 = vst [vmem:[#allocation16_spill] sm:$0xff] %v2406_v23 }
 0x1d3   : > { %1635 = vmatprep.subr.bf16.mxu1 %v2236_v36 }
 0x1d4   : > { %v570_v28 = vpop.f32.mrb[2].mxu0 }
 0x1d5   : > { %1618 = vmatmul.mubr.msk.f32.gmra.mrb[2].mxu1 %vm362_vm2, %v361_v27  ;;  %v572_v29 = vpop.f32.mrb[3].mxu0  ;;  %609 = vrot.lane.b32.xlu0 %v570_v28, %s1930_s24  ;;  %v2359_v34 = vpop.permute.xlu1 %936 }
 0x1d6   : > { %1637 = vmatpush1.bf16.msra.mxu1 %v2243_v38  ;;  %611 = vrot.lane.b32.xlu1 %v572_v29, %s1930_s24  ;;  %v788_v29 = vsel %vm787_vm5, %v2257_v42, %v2321_v18 }
 0x1d7   : > { %574 = vmatprep.mubr.f32.mxu1 %v1906_v13 }
 0x1d9   : > { %1579 = vmatmul.mubr.msk.f32.vlgmr.msra.gmra.mrb[4].mxu1 %vm283_vm1, %v489_v30  ;;  %v2366_v36 = vpop.permute.xlu1 %967 }
 0x1da   : > { %580 = vmatprep.mubr.f32.mxu1 %v1906_v13 }
 0x1dd   : > { %1580 = vmatmul.mubr.msk.f32.gmra.mrb[6].mxu1 %vm283_vm1, %v490_v32  ;;  %v2368_v38 = vpop.permute.xlu1 %998 }
 0x1de   : > { %586 = vmatprep.mubr.f32.mxu1 %v1906_v13 }
 0x1e1   : > { %1581 = vmatmul.mubr.msk.f32.gmra.mrb[8].mxu1 %vm283_vm1, %v491_v35  ;;  %v2370_v40 = vpop.permute.xlu1 %1029  ;;  %vm2786_vm1 = vcmask 908288  }
 0x1e5   : > { %v2372_v56 = vpop.permute.xlu1 %1060 }
 0x1e9   : > { %v2374_v57 = vpop.permute.xlu1 %1093 }
 0x1ed   : > { %v2376_v58 = vpop.permute.xlu1 %1124 }
 0x1f1   : > { %v2378_v60 = vpop.permute.xlu1 %1165 }
 0x1f5   : > { %v2380_v13 = vpop.permute.xlu1 %1194 }
 0x1f9   : > { %v2382_v61 = vpop.permute.xlu1 %1223 }
 0x1fd   : > { %v2384_v0 = vpop.permute.xlu1 %1249 }
 0x201   : > { %v2386_v1 = vpop.permute.xlu1 %1278 }
 0x205   : > { %v2388_v3 = vpop.permute.xlu1 %1309 }
 0x209   : > { %v2392_v5 = vpop.permute.xlu1 %1338 }
 0x20d   : > { %v2396_v8 = vpop.permute.xlu1 %1367 }
 0x211   : > { %v2400_v10 = vpop.permute.xlu1 %1215 }
 0x212   : > { %2806 = vst [vmem:[#allocation13_spill] sm:$0xff] %v2400_v10 }
 0x215   : > { %v2404_v22 = vpop.permute.xlu1 %1270 }
 0x216   : > { %2808 = vst [vmem:[#allocation15_spill] sm:$0xff] %v2404_v22 }
 0x219   : > { %v2408_v24 = vpop.permute.xlu1 %1330 }
 0x21a   : > { %2810 = vst [vmem:[#allocation17_spill] sm:$0xff] %v2408_v24 }
 0x247   : > { %v610_v25 = vpop.permute.xlu0 %609 }
 0x248   : > { %v2411_v27 = vsel %vm625_vm4, 0.0, %v610_v25  ;;  %v612_v28 = vpop.permute.xlu1 %611 }
 0x249   : > { %v2417_v30 = vsel %vm625_vm4, %v610_v25, %v612_v28  ;;  %v792_v32 = vmul.f32 %v2257_v42, %v2411_v27  ;;  %v2422_v35 = vsel %vm625_vm4, %v612_v28, 0.0  ;;  %v699_v24 = vmul.f32 %v2315_v12, %v2411_v27 }
 0x24a   : > { %v793_v23 = vmul.f32 %v788_v29, %v2417_v30  ;;  %v794_v21 = vmul.f32 %v2321_v18, %v2422_v35  ;;  %v669_v25 = vmul.f32 %v2224_v33, %v2411_v27  ;;  %v761_v42 = vmul.f32 %v2319_v17, %v2411_v27 }
 0x24b   : > { %798 = vrot.lane.b32.xlu0 %v792_v32, %s1926_s29  ;;  %v705_v22 = vrot.slane %v699_v24, 5  ;;  %v730_v29 = vmul.f32 %v2248_v39, %v2411_v27  ;;  %v820_v18 = vmul.f32 %v2323_v19, %v2411_v27  ;;  %v665_v24 = vsel %vm664_vm6, %v2224_v33, %v2313_v11 }
 0x24c   : > { %800 = vrot.lane.b32.xlu1 %v793_v23, %s1926_s29  ;;  %v675_v28 = vrot.slane %v669_v25, 4  ;;  %v767_v23 = vrot.slane %v761_v42, 7  ;;  %v670_v25 = vmul.f32 %v665_v24, %v2417_v30  ;;  %v701_v33 = vmul.f32 %v2238_v37, %v2422_v35 }
 0x24d   : > { %v826_v32 = vrot.slane %v820_v18, 1  ;;  %v726_v18 = vsel %vm725_vm7, %v2248_v39, %v2317_v16  ;;  %v757_v39 = vsel %vm756_vm8, %v2319_v17, %v2254_v41 }
 0x24f   : > { %802 = vrot.lane.b32.xlu0 %v794_v21, %s1926_s29  ;;  %v736_v21 = vrot.slane %v730_v29, 6  ;;  %v695_v29 = vsel %vm362_vm2, %v2315_v12, %v2238_v37  ;;  %v732_v37 = vmul.f32 %v2317_v16, %v2422_v35  ;;  %v822_v16 = vmul.f32 %v2259_v43, %v2422_v35 }
 0x250   : > { %708 = vrot.lane.b32.xlu1 %v705_v22, %s1923_s14  ;;  %v851_v22 = vmul.f32 %v2261_v44, %v2411_v27 }
 0x252   : > { %v857_v42 = vrot.slane %v851_v22, 2  ;;  %v731_v22 = vmul.f32 %v726_v18, %v2417_v30  ;;  %v828_v18 = vrot.slane %v822_v16, 1 }
 0x253   : > { %678 = vrot.lane.b32.xlu0 %v675_v28, %s1925_s13  ;;  %v671_v28 = vmul.f32 %v2313_v11, %v2422_v35  ;;  %v700_v11 = vmul.f32 %v695_v29, %v2417_v30 }
 0x254   : > { %770 = vrot.lane.b32.xlu1 %v767_v23, %s1927_s28  ;;  %v676_v23 = vrot.slane %v670_v25, 4  ;;  %v737_v12 = vrot.slane %v731_v22, 6  ;;  %v763_v25 = vmul.f32 %v2254_v41, %v2422_v35  ;;  %v847_v41 = vsel %vm846_vm10, %v2261_v44, %v2325_v20 }
 0x255   : > { %v677_v24 = vrot.slane %v671_v28, 4  ;;  %v762_v28 = vmul.f32 %v757_v39, %v2417_v30 }
 0x257   : > { %739 = vrot.lane.b32.xlu0 %v736_v21, %s1924_s15  ;;  %v707_v21 = vrot.slane %v701_v33, 5  ;;  %v816_v33 = vsel %vm815_vm9, %v2323_v19, %v2259_v43  ;;  %v768_v17 = vrot.slane %v762_v28, 7  ;;  %v853_v43 = vmul.f32 %v2325_v20, %v2422_v35 }
 0x258   : > { %829 = vrot.lane.b32.xlu1 %v826_v32, %s1929_s11  ;;  %v706_v32 = vrot.slane %v700_v11, 5  ;;  %v821_v29 = vmul.f32 %v816_v33, %v2417_v30  ;;  %v649_v20 = vmul.f32 %v2417_v30, %v2169_v15 }
 0x259   : > { %v859_v44 = vrot.slane %v853_v43, 2 }
 0x25a   : > { %v827_v11 = vrot.slane %v821_v29, 1  ;;  %v653_v39 = vrot.slane %v649_v20, 3 }
 0x25b   : > { %860 = vrot.lane.b32.xlu0 %v857_v42, %s1928_s12  ;;  %v738_v42 = vrot.slane %v732_v37, 6 }
 0x25c   : > { %680 = vrot.lane.b32.xlu1 %v676_v23, %s1925_s13  ;;  %v769_v23 = vrot.slane %v763_v25, 7 }
 0x25f   : > { %682 = vrot.lane.b32.xlu0 %v677_v24, %s1925_s13  ;;  %v852_v24 = vmul.f32 %v847_v41, %v2417_v30 }
 0x260   : > { %712 = vrot.lane.b32.xlu1 %v707_v21, %s1923_s14 }
 0x261   : > { %v858_v19 = vrot.slane %v852_v24, 2 }
 0x263   : > { %710 = vrot.lane.b32.xlu0 %v706_v32, %s1923_s14  ;;  %v648_v32 = vmul.f32 %v2411_v27, %v2167_v14 }
 0x264   : > { %741 = vrot.lane.b32.xlu1 %v737_v12, %s1924_s15 }
 0x265   : > { %v652_v12 = vrot.slane %v648_v32, 3 }
 0x267   : > { %743 = vrot.lane.b32.xlu0 %v738_v42, %s1924_s15 }
 0x268   : > { %774 = vrot.lane.b32.xlu1 %v769_v23, %s1927_s28 }
 0x26b   : > { %772 = vrot.lane.b32.xlu0 %v768_v17, %s1927_s28 }
 0x26c   : > { %833 = vrot.lane.b32.xlu1 %v828_v18, %s1929_s11 }
 0x26f   : > { %831 = vrot.lane.b32.xlu0 %v827_v11, %s1929_s11 }
 0x270   : > { %862 = vrot.lane.b32.xlu1 %v858_v19, %s1928_s12 }
 0x273   : > { %864 = vrot.lane.b32.xlu0 %v859_v44, %s1928_s12 }
 0x2a4   : > { %v2496_v21 = vpop.f32.mrb[0].mxu1 }
 0x2a5   : > { %v2498_v22 = vpop.f32.mrb[1].mxu1 }
 0x2a8   : > { %v2502_v37 = vpop.f32.mrb[2].mxu1 }
 0x2a9   : > { %v2506_v35 = vpop.f32.mrb[3].mxu1 }
 0x2ac   : > { %v576_v25 = vpop.f32.mrb[4].mxu1 }
 0x2ad   : > { %v656_v42 = vadd.f32 %v652_v12, %v576_v25  ;;  %v578_v28 = vpop.f32.mrb[5].mxu1  ;;  %613 = vrot.lane.b32.xlu1 %v576_v25, %s1930_s24 }
 0x2ae   : > { %v657_v23 = vadd.f32 %v653_v39, %v578_v28 }
 0x2b0   : > { %v582_v16 = vpop.f32.mrb[6].mxu1 }
 0x2b1   : > { %617 = vrot.lane.b32.xlu0 %v582_v16, %s1930_s24  ;;  %615 = vrot.lane.b32.xlu1 %v578_v28, %s1930_s24  ;;  %v584_v14 = vpop.f32.mrb[7].mxu1 }
 0x2b4   : > { %v588_v27 = vpop.f32.mrb[8].mxu1 }
 0x2b5   : > { %619 = vrot.lane.b32.xlu1 %v584_v14, %s1930_s24  ;;  %v590_v15 = vpop.f32.mrb[9].mxu1  ;;  %621 = vrot.lane.b32.xlu0 %v588_v27, %s1930_s24 }
 0x2b9   : > { %623 = vrot.lane.b32.xlu1 %v590_v15, %s1930_s24  ;;  %s2811_s24 = smov 64  }
 0x2bd   : > { %v799_v30 = vpop.permute.xlu0 %798 }
 0x2be   : > { %v801_v33 = vpop.permute.xlu1 %800 }
 0x2bf   : > { %v805_v41 = vsel %vm2789_vm11, %v799_v30, %v801_v33 }
 0x2c1   : > { %v803_v17 = vpop.permute.xlu0 %802 }
 0x2c2   : > { %v806_v29 = vsel %vm2789_vm11, %v801_v33, %v803_v17  ;;  %v709_v18 = vpop.permute.xlu1 %708  ;;  %vm1002_vm11 = vcmask 588800  }
 0x2c5   : > { %v679_v24 = vpop.permute.xlu0 %678 }
 0x2c6   : > { %v771_v11 = vpop.permute.xlu1 %770 }
 0x2c9   : > { %v740_v43 = vpop.permute.xlu0 %739 }
 0x2ca   : > { %v830_v19 = vpop.permute.xlu1 %829 }
 0x2cd   : > { %v861_v44 = vpop.permute.xlu0 %860 }
 0x2ce   : > { %v681_v32 = vpop.permute.xlu1 %680 }
 0x2cf   : > { %v685_v20 = vsel %vm684_vm12, %v679_v24, %v681_v32 }
 0x2d0   : > { %v689_v12 = vadd.f32 %v685_v20, %v656_v42 }
 0x2d1   : > { %v683_v25 = vpop.permute.xlu0 %682 }
 0x2d2   : > { %v686_v39 = vsel %vm684_vm12, %v681_v32, %v683_v25  ;;  %v713_v28 = vpop.permute.xlu1 %712 }
 0x2d3   : > { %v690_v16 = vadd.f32 %v686_v39, %v657_v23 }
 0x2d5   : > { %v711_v14 = vpop.permute.xlu0 %710 }
 0x2d6   : > { %v715_v27 = vsel %vm714_vm13, %v709_v18, %v711_v14  ;;  %v716_v15 = vsel %vm714_vm13, %v711_v14, %v713_v28  ;;  %v742_v30 = vpop.permute.xlu1 %741 }
 0x2d7   : > { %v719_v33 = vadd.f32 %v715_v27, %v689_v12  ;;  %v720_v17 = vadd.f32 %v716_v15, %v690_v16  ;;  %v746_v7 = vsel %vm2791_vm14, %v740_v43, %v742_v30 }
 0x2d9   : > { %v750_v10 = vadd.f32 %v746_v7, %v719_v33  ;;  %v744_v24 = vpop.permute.xlu0 %743 }
 0x2da   : > { %v747_v42 = vsel %vm2791_vm14, %v742_v30, %v744_v24  ;;  %v775_v20 = vpop.permute.xlu1 %774  ;;  %vm1033_vm14 = vcmask 605184  }
 0x2db   : > { %v751_v32 = vadd.f32 %v747_v42, %v720_v17  ;;  %v1931_v42 = vmov 0  }
 0x2dc   : > { %1734 = vset.pattern.permute.xlu0 %v1931_v42  ;;  %1735 = vset.pattern.permute.xlu1 %v1931_v42 }
 0x2dd   : > { %v773_v23 = vpop.permute.xlu0 %772 }
 0x2de   : > { %v777_v25 = vsel %vm2790_vm15, %v771_v11, %v773_v23  ;;  %v778_v39 = vsel %vm2790_vm15, %v773_v23, %v775_v20  ;;  %v834_v18 = vpop.permute.xlu1 %833  ;;  %vm1064_vm15 = vcmask 654336  }
 0x2df   : > { %v781_v9 = vadd.f32 %v777_v25, %v750_v10  ;;  %v782_v28 = vadd.f32 %v778_v39, %v751_v32 }
 0x2e1   : > { %v832_v12 = vpop.permute.xlu0 %831  ;;  %v809_v16 = vadd.f32 %v805_v41, %v781_v9  ;;  %v810_v43 = vadd.f32 %v806_v29, %v782_v28 }
 0x2e2   : > { %v836_v7 = vsel %vm2787_vm0, %v830_v19, %v832_v12  ;;  %v837_v14 = vsel %vm2787_vm0, %v832_v12, %v834_v18  ;;  %v863_v27 = vpop.permute.xlu1 %862  ;;  %vm910_vm0 = vcmask 523264  }
 0x2e3   : > { %v840_v15 = vadd.f32 %v836_v7, %v809_v16  ;;  %v841_v30 = vadd.f32 %v837_v14, %v810_v43  ;;  %v867_v33 = vsel %vm2786_vm1, %v861_v44, %v863_v27  ;;  %v880_v43 = vsel %vm879_vm3, %v2335_v26, %v2263_v45 }
 0x2e5   : > { %v2527_v11 = vadd.f32 %v867_v33, %v840_v15  ;;  %v865_v17 = vpop.permute.xlu0 %864 }
 0x2e6   : > { %v868_v10 = vsel %vm2786_vm1, %v863_v27, %v865_v17  ;;  %vm940_vm1 = vcmask 531456  }
 0x2e7   : > { %v2530_v24 = vadd.f32 %v868_v10, %v841_v30  ;;  %v941_v42 = vsel %vm940_vm1, %v2359_v34, %v2267_v47  ;;  %vm971_vm1 = vcmask 539648  }
 0x31f   : > { %v614_v9 = vpop.permute.xlu1 %613 }
 0x320   : > { %v642_v41 = vsel %vm625_vm4, 0.0, %v614_v9 }
 0x321   : > { %v915_v29 = vmul.f32 %v2351_v31, %v642_v41  ;;  %v884_v19 = vmul.f32 %v2335_v26, %v642_v41  ;;  %v976_v44 = vmul.f32 %v2366_v36, %v642_v41  ;;  %v945_v23 = vmul.f32 %v2359_v34, %v642_v41 }
 0x322   : > { %v1038_v28 = vmul.f32 %v2370_v40, %v642_v41  ;;  %v1007_v16 = vmul.f32 %v2368_v38, %v642_v41  ;;  %v1069_v30 = vmul.f32 %v2372_v56, %v642_v41 }
 0x323   : > { %v921_v20 = vrot.slane %v915_v29, 4  ;;  %v890_v32 = vrot.slane %v884_v19, 3  ;;  %v616_v25 = vpop.permute.xlu1 %615  ;;  %v982_v39 = vrot.slane %v976_v44, 6  ;;  %v951_v18 = vrot.slane %v945_v23, 5 }
 0x324   : > { %v627_v12 = vsel %vm625_vm4, %v614_v9, %v616_v25  ;;  %v1044_v7 = vrot.slane %v1038_v28, 1  ;;  %v645_v27 = vsel %vm625_vm4, %v616_v25, 0.0  ;;  %v1013_v15 = vrot.slane %v1007_v16, 7 }
 0x325   : > { %924 = vrot.lane.b32.xlu0 %v921_v20, %s2811_s24  ;;  %893 = vrot.lane.b32.xlu1 %v890_v32, %s1932_s16  ;;  %v885_v14 = vmul.f32 %v880_v43, %v627_v12  ;;  %v917_v17 = vmul.f32 %v2265_v46, %v645_v27  ;;  %v1075_v10 = vrot.slane %v1069_v30, 2  ;;  %v886_v26 = vmul.f32 %v2263_v45, %v645_v27  ;;  %v618_v30 = vpop.permute.xlu0 %617 }
 0x326   : > { %v911_v9 = vsel %vm910_vm0, %v2351_v31, %v2265_v46  ;;  %v946_v29 = vmul.f32 %v941_v42, %v627_v12  ;;  %v978_v32 = vmul.f32 %v2269_v48, %v645_v27  ;;  %v947_v44 = vmul.f32 %v2267_v47, %v645_v27 }
 0x327   : > { %v891_v33 = vrot.slane %v885_v14, 3  ;;  %v923_v41 = vrot.slane %v917_v17, 4  ;;  %v892_v19 = vrot.slane %v886_v26, 3  ;;  %v916_v20 = vmul.f32 %v911_v9, %v627_v12 }
 0x328   : > { %v952_v45 = vrot.slane %v946_v29, 5  ;;  %v1003_v46 = vsel %vm1002_vm11, %v2368_v38, %v2271_v49  ;;  %v972_v31 = vsel %vm971_vm1, %v2366_v36, %v2269_v48  ;;  %v984_v23 = vrot.slane %v978_v32, 6 }
 0x329   : > { %985 = vrot.lane.b32.xlu0 %v982_v39, %s1933_s17  ;;  %954 = vrot.lane.b32.xlu1 %v951_v18, %s1934_s27  ;;  %v922_v34 = vrot.slane %v916_v20, 4  ;;  %v1008_v25 = vmul.f32 %v1003_v46, %v627_v12  ;;  %v953_v39 = vrot.slane %v947_v44, 5  ;;  %v977_v18 = vmul.f32 %v972_v31, %v627_v12 }
 0x32a   : > { %v1040_v28 = vmul.f32 %v2273_v50, %v645_v27  ;;  %v1009_v38 = vmul.f32 %v2271_v49, %v645_v27  ;;  %v1065_v48 = vsel %vm1064_vm15, %v2372_v56, %v2275_v51  ;;  %v1034_v36 = vsel %vm1033_vm14, %v2370_v40, %v2273_v50 }
 0x32b   : > { %v1014_v47 = vrot.slane %v1008_v25, 7  ;;  %v983_v16 = vrot.slane %v977_v18, 6  ;;  %v643_v17 = vsel %vm625_vm4, 0.0, %v618_v30  ;;  %v1071_v26 = vmul.f32 %v2275_v51, %v645_v27 }
 0x32c   : > { %v1046_v43 = vrot.slane %v1040_v28, 1  ;;  %v1015_v14 = vrot.slane %v1009_v38, 7  ;;  %v1102_v50 = vmul.f32 %v2374_v57, %v643_v17  ;;  %vm1128_vm11 = vcmask 670720  }
 0x32d   : > { %1047 = vrot.lane.b32.xlu0 %v1044_v7, %s1935_s10  ;;  %1016 = vrot.lane.b32.xlu1 %v1013_v15, %s1936_s26  ;;  %v1070_v7 = vmul.f32 %v1065_v48, %v627_v12  ;;  %v1039_v15 = vmul.f32 %v1034_v36, %v627_v12  ;;  %v1077_v42 = vrot.slane %v1071_v26, 2  ;;  %v1227_v51 = vsel %vm725_vm7, %v2382_v61, %v2287_v59 }
 0x32e   : > { %v1108_v27 = vrot.slane %v1102_v50, 3  ;;  %vm1097_vm14 = vcmask 662528   ;;  %v1574_v31 = vmul.f32 -1.442695, %v2498_v22  ;;  %vm1053_vm7 = vcmask 441344  }
 0x32f   : > { %v1076_v49 = vrot.slane %v1070_v7, 2  ;;  %v1098_v20 = vsel %vm1097_vm14, %v2374_v57, %v2277_v52  ;;  %v1169_v57 = vsel %vm664_vm6, %v2378_v60, %v2281_v54  ;;  %vm1022_vm6 = vcmask 457728  }
 0x330   : > { %1736 = vpow2.f32 %v1574_v31  ;;  %vm2814_vm15 = vcmask 982016   ;;  %vm2824_vm14 = vcmask 908288  }
 0x331   : > { %895 = vrot.lane.b32.xlu0 %v891_v33, %s1932_s16  ;;  %1078 = vrot.lane.b32.xlu1 %v1075_v10, %s1937_s6  ;;  %v620_v33 = vpop.permute.xlu1 %619  ;;  %v1045_v10 = vrot.slane %v1039_v15, 1 }
 0x332   : > { %v2584_v56 = vsel %vm625_vm4, %v618_v30, %v620_v33  ;;  %v2593_v12 = vsel %vm625_vm4, %v620_v33, 0.0 }
 0x333   : > { %v1231_v40 = vmul.f32 %v2382_v61, %v2584_v56  ;;  %v1104_v9 = vmul.f32 %v2277_v52, %v2593_v12  ;;  %v1232_v29 = vmul.f32 %v1227_v51, %v2593_v12  ;;  %v1103_v32 = vmul.f32 %v1098_v20, %v2584_v56 }
 0x334   : > { %v1173_v44 = vmul.f32 %v2378_v60, %v2584_v56  ;;  %v1198_v52 = vsel %vm362_vm2, %v2380_v13, %v2283_v55  ;;  %v1174_v18 = vmul.f32 %v1169_v57, %v2593_v12  ;;  %v1253_v55 = vsel %vm756_vm8, %v2384_v0, %v2292_v62 }
 0x335   : > { %928 = vrot.lane.b32.xlu0 %v923_v41, %s2811_s24  ;;  %897 = vrot.lane.b32.xlu1 %v892_v19, %s1932_s16  ;;  %v1133_v41 = vmul.f32 %v2376_v58, %v643_v17  ;;  %v1129_v19 = vsel %vm1128_vm11, %v2376_v58, %v2279_v53  ;;  %v1110_v59 = vrot.slane %v1104_v9, 3  ;;  %v1109_v46 = vrot.slane %v1103_v32, 3  ;;  %v624_v28 = vpop.permute.xlu1 %623 }
 0x336   : > { %v1134_v61 = vmul.f32 %v1129_v19, %v2584_v56  ;;  %v1135_v58 = vmul.f32 %v2279_v53, %v2593_v12  ;;  %v1203_v25 = vmul.f32 %v1198_v52, %v2593_v12  ;;  %v1577_v53 = vmul.f32 -1.442695, %v2502_v37 }
 0x337   : > { %v1180_v54 = vrot.slane %v1174_v18, 6  ;;  %v1202_v60 = vmul.f32 %v2380_v13, %v2584_v56  ;;  %v1575_v37 = vmul.f32 -1.442695, %v2496_v21  ;;  %v1286_v62 = vmul.f32 %v2386_v1, %v2584_v56 }
 0x338   : > { %v1209_v22 = vrot.slane %v1203_v25, 7  ;;  %1738 = vpow2.f32 %v1577_v53  ;;  %v647_v38 = vsel %vm625_vm4, %v624_v28, 0.0  ;;  %v1257_v36 = vmul.f32 %v2384_v0, %v2584_v56 }
 0x339   : > { %956 = vrot.lane.b32.xlu0 %v952_v45, %s1934_s27  ;;  %926 = vrot.lane.b32.xlu1 %v922_v34, %s2811_s24  ;;  %s1938_s24 = smov 47   ;;  %v1139_v45 = vrot.slane %v1133_v41, 4  ;;  %v1140_v34 = vrot.slane %v1134_v61, 4  ;;  %v1208_v48 = vrot.slane %v1202_v60, 7  ;;  %v1313_v13 = vsel %vm815_vm9, %v2388_v3, %v2299_v2 }
 0x33a   : > { %1740 = vpow2.f32 %v1575_v37  ;;  %v1576_v21 = vmul.f32 -1.442695, %v2506_v35  ;;  %v1737_v7 = vpop.eup %1736  ;;  %v1318_v15 = vmul.f32 %v1313_v13, %v647_v38  ;;  %v1292_v30 = vrot.slane %v1286_v62, 2 }
 0x33b   : > { %v1263_v33 = vrot.slane %v1257_v36, 1  ;;  %v476_v2 = vadd.f32 1.0, %v1737_v7  ;;  %v1377_v61 = vmul.f32 0.0, %v2390_v4  ;;  %vm899_vm2 = vcmask 900096  }
 0x33c   : > { %1742 = vpow2.f32 %v1576_v21  ;;  %v1324_v17 = vrot.slane %v1318_v15, 3  ;;  %vm1084_vm8 = vcmask 392192   ;;  %vm1117_vm9 = vcmask 384000  }
 0x33d   : > { %989 = vrot.lane.b32.xlu0 %v984_v23, %s1933_s17  ;;  %958 = vrot.lane.b32.xlu1 %v953_v39, %s1934_s27  ;;  %v1179_v23 = vrot.slane %v1173_v44, 6  ;;  %v1141_v39 = vrot.slane %v1135_v58, 4  ;;  %1744 = vrcp.f32 %v476_v2  ;;  %vm2823_vm11 = vcmask 916480  }
 0x341   : > { %1018 = vrot.lane.b32.xlu0 %v1014_v47, %s1936_s26  ;;  %987 = vrot.lane.b32.xlu1 %v983_v16, %s1933_s17  ;;  %v1258_v47 = vmul.f32 %v1253_v55, %v2593_v12 }
 0x342   : > { %v1739_v35 = vpop.eup %1738 }
 0x343   : > { %v1264_v16 = vrot.slane %v1258_v47, 1  ;;  %v479_v50 = vadd.f32 1.0, %v1739_v35 }
 0x345   : > { %1051 = vrot.lane.b32.xlu0 %v1046_v43, %s1935_s10  ;;  %1020 = vrot.lane.b32.xlu1 %v1015_v14, %s1936_s26  ;;  %v622_v43 = vpop.permute.xlu0 %621  ;;  %v1282_v14 = vsel %vm787_vm5, %v2386_v1, %v2295_v63  ;;  %v1371_v1 = vsel %vm879_vm3, %v2396_v8, %v2390_v4  ;;  %1746 = vrcp.f32 %v479_v50  ;;  %vm991_vm5 = vcmask 506880  }
 0x346   : > { %v629_v0 = vsel %vm625_vm4, %v622_v43, %v624_v28  ;;  %v1376_v51 = vmul.f32 %v1371_v1, %v647_v38  ;;  %vm960_vm4 = vcmask 515072   ;;  %vm2818_vm3 = vcmask 965632  }
 0x347   : > { %v1317_v26 = vmul.f32 %v2388_v3, %v629_v0  ;;  %vm2822_vm1 = vmmov %vm2818_vm3 }
 0x349   : > { %1080 = vrot.lane.b32.xlu0 %v1076_v49, %s1937_s6  ;;  %1049 = vrot.lane.b32.xlu1 %v1045_v10, %s1935_s10  ;;  %v1287_v49 = vmul.f32 %v1282_v14, %v2593_v12  ;;  %v1346_v10 = vmul.f32 %v2392_v5, %v629_v0  ;;  %v1323_v9 = vrot.slane %v1317_v26, 3 }
 0x34b   : > { %v1293_v63 = vrot.slane %v1287_v49, 2 }
 0x34d   : > { %1237 = vrot.lane.b32.xlu0 %v1231_v40, %s1924_s15  ;;  %1082 = vrot.lane.b32.xlu1 %v1077_v42, %s1937_s6  ;;  %s1939_s6 = smov 46   ;;  %v1342_v40 = vsel %vm846_vm10, %v2392_v5, %v2302_v6  ;;  %v1352_v42 = vrot.slane %v1346_v10, 4  ;;  %vm1148_vm10 = vcmask 375808  }
 0x34e   : > { %v1347_v3 = vmul.f32 %v1342_v40, %v647_v38 }
 0x350   : > { %v1353_v20 = vrot.slane %v1347_v3, 4 }
 0x351   : > { %1111 = vrot.lane.b32.xlu0 %v1108_v27, %s1938_s24  ;;  %1239 = vrot.lane.b32.xlu1 %v1232_v29, %s1924_s15  ;;  %v1741_v27 = vpop.eup %1740  ;;  %v1382_v29 = vrot.slane %v1376_v51, 5 }
 0x352   : > { %v477_v41 = vadd.f32 1.0, %v1741_v27  ;;  %v1743_v19 = vpop.eup %1742 }
 0x353   : > { %v478_v6 = vadd.f32 1.0, %v1743_v19  ;;  %v1745_v5 = vpop.eup %1744 }
 0x354   : > { %1748 = vrcp.f32 %v477_v41  ;;  %v1747_v32 = vpop.eup %1746 }
 0x355   : > { %1115 = vrot.lane.b32.xlu0 %v1110_v59, %s1938_s24  ;;  %1142 = vrot.lane.b32.xlu1 %v1139_v45, %s1939_s6  ;;  %v1375_v59 = vmul.f32 %v2396_v8, %v629_v0  ;;  %1750 = vrcp.f32 %v478_v6 }
 0x357   : > { %v1381_v45 = vrot.slane %v1375_v59, 5 }
 0x359   : > { %1144 = vrot.lane.b32.xlu0 %v1140_v34, %s1939_s6  ;;  %1113 = vrot.lane.b32.xlu1 %v1109_v46, %s1938_s24  ;;  %v1383_v34 = vrot.slane %v1377_v61, 5 }
 0x35d   : > { %1182 = vrot.lane.b32.xlu0 %v1179_v23, %s1925_s13  ;;  %1146 = vrot.lane.b32.xlu1 %v1141_v39, %s1939_s6 }
 0x35e   : > { %v1749_v8 = vpop.eup %1748 }
 0x35f   : > { %v1751_v44 = vpop.eup %1750 }
 0x361   : > { %1213 = vrot.lane.b32.xlu0 %v1209_v22, %s1923_s14  ;;  %1184 = vrot.lane.b32.xlu1 %v1180_v54, %s1925_s13 }
 0x365   : > { %1268 = vrot.lane.b32.xlu0 %v1264_v16, %s1927_s28  ;;  %1211 = vrot.lane.b32.xlu1 %v1208_v48, %s1923_s14  ;;  %s2829_s14 = sshll.u32 %s2117_s23, 6 }
 0x366   : > { %s257_s15 = scalar_lea.vmem [#allocation7], %s2829_s14 }
 0x367   : > { %s1474_s13 = sshll.u32 %s257_s15, 4  ;;  %s2722_s13 = int_to_ptr.vmem [resolvable:$true] %s1474_s13 }
 0x369   : > { %1295 = vrot.lane.b32.xlu0 %v1292_v30, %s1926_s29  ;;  %1266 = vrot.lane.b32.xlu1 %v1263_v33, %s1927_s28 }
 0x36d   : > { %1328 = vrot.lane.b32.xlu0 %v1324_v17, %s1929_s11  ;;  %1297 = vrot.lane.b32.xlu1 %v1293_v63, %s1926_s29  ;;  %s1590_s29 = sshll.u32 %s1993_s22, 10 }
 0x371   : > { %1355 = vrot.lane.b32.xlu0 %v1352_v42, %s1928_s12  ;;  %1326 = vrot.lane.b32.xlu1 %v1323_v9, %s1929_s11  ;;  %s1828_s11 = scalar_lea.vmem %s2722_s13, 1024 }
 0x372   : > { %p1829_p4 = scmp.ne.s32.totalorder %s2722_s13, %s1828_s11 }
 0x374   : > { %p1830_p6 = pnand %p1829_p4, %p2066_p12 }
 0x375   : > { %1386 = vrot.lane.b32.xlu0 %v1382_v29, %s1932_s16  ;;  %1357 = vrot.lane.b32.xlu1 %v1353_v20, %s1928_s12  ;;  %s2727_s12 = scalar_lea.hbm %s2777_s5, %s1590_s29 }
 0x376   : > { %p1831_p8 = pneg %p1830_p6 }
 0x379   : > { %1426 = vperm.xlu0 %1734, %v1745_v5   ;;  %1384 = vrot.lane.b32.xlu1 %v1381_v45, %s1932_s16  ;;  %v1760_v5 = vld [vmem:[#allocation5 + $0x20] sm:$0xff] }
 0x37a   : > { %v1155_v61 = vmul.f32 %v1760_v5, %v2584_v56 }
 0x37d   : > { %1441 = vperm.xlu0 %1734, %v1747_v32   ;;  %1388 = vrot.lane.b32.xlu1 %v1383_v34, %s1932_s16  ;;  %s1940_s16 = smov [#allocation7]  }
 0x37e   : > { %s1832_s17 = sshll.u32 %s1940_s16, 4  ;;  %s1833_s17 = int_to_ptr.vmem [resolvable:$false] %s1832_s17 }
 0x37f   : > { %s1834_s27 = scalar_lea.vmem %s1833_s17, 2048  ;;  %p1835_p10 = scmp.lt.s32.totalorder %s2722_s13, %s1833_s17 }
 0x380   : > { %p1836_p13 = scmp.lt.s32.totalorder %s1834_s27, %s1828_s11 }
 0x381   : > { %1431 = vperm.xlu1 %1735, %v1749_v8  }
 0x382   : > { %p1837_p3 = por %p1836_p13, %p1835_p10 }
 0x384   : > { %p1838_p7 = pnand %p1837_p3, %p1831_p8 }
 0x385   : > { %1436 = vperm.xlu1 %1735, %v1751_v44   ;;  %v1761_v44 = vld [vmem:[#allocation5 + $0x28] sm:$0xff] }
 0x397   : > { %v925_v46 = vpop.permute.xlu0 %924  ;;  %v894_v58 = vpop.permute.xlu1 %893 }
 0x39b   : > { %v986_v31 = vpop.permute.xlu0 %985  ;;  %v955_v52 = vpop.permute.xlu1 %954 }
 0x39f   : > { %v1048_v57 = vpop.permute.xlu0 %1047  ;;  %v1017_v4 = vpop.permute.xlu1 %1016 }
 0x3a3   : > { %v896_v23 = vpop.permute.xlu0 %895  ;;  %v1079_v25 = vpop.permute.xlu1 %1078 }
 0x3a4   : > { %v900_v28 = vsel %vm899_vm2, %v894_v58, %v896_v23 }
 0x3a5   : > { %v904_v38 = vadd.f32 %v900_v28, %v2527_v11 }
 0x3a7   : > { %v929_v39 = vpop.permute.xlu0 %928  ;;  %v898_v18 = vpop.permute.xlu1 %897 }
 0x3a8   : > { %v901_v13 = vsel %vm899_vm2, %v896_v23, %v898_v18  ;;  %v1159_v23 = vrot.slane %v1155_v61, 5 }
 0x3a9   : > { %v905_v33 = vadd.f32 %v901_v13, %v2530_v24 }
 0x3ab   : > { %v957_v53 = vpop.permute.xlu0 %956  ;;  %v927_v55 = vpop.permute.xlu1 %926 }
 0x3ac   : > { %v930_v62 = vsel %vm910_vm0, %v925_v46, %v927_v55  ;;  %v961_v21 = vsel %vm960_vm4, %v955_v52, %v957_v53  ;;  %v931_v0 = vsel %vm910_vm0, %v927_v55, %v929_v39  ;;  %v1156_v46 = vmul.f32 %v1761_v44, %v2593_v12  ;;  %v2812_v12 = vld [vmem:[#allocation12_spill] sm:$0xff]  ;;  %vm2816_vm0 = vmmov %vm2814_vm15 }
 0x3ad   : > { %v934_v36 = vadd.f32 %v930_v62, %v904_v38  ;;  %v935_v35 = vadd.f32 %v931_v0, %v905_v33  ;;  %v2815_v33 = vld [vmem:[#allocation11_spill] sm:$0xff] }
 0x3ae   : > { %v1160_v18 = vrot.slane %v1156_v46, 5 }
 0x3af   : > { %v990_v22 = vpop.permute.xlu0 %989  ;;  %v959_v47 = vpop.permute.xlu1 %958  ;;  %v965_v15 = vadd.f32 %v961_v21, %v934_v36 }
 0x3b0   : > { %v962_v49 = vsel %vm960_vm4, %v957_v53, %v959_v47  ;;  %vm2826_vm4 = vmmov %vm2823_vm11 }
 0x3b1   : > { %v966_v1 = vadd.f32 %v962_v49, %v935_v35 }
 0x3b3   : > { %v1019_v54 = vpop.permute.xlu0 %1018  ;;  %v988_v60 = vpop.permute.xlu1 %987 }
 0x3b4   : > { %v992_v7 = vsel %vm991_vm5, %v986_v31, %v988_v60  ;;  %v1023_v10 = vsel %vm1022_vm6, %v1017_v4, %v1019_v54  ;;  %v993_v26 = vsel %vm991_vm5, %v988_v60, %v990_v22  ;;  %vm2828_vm5 = vmmov %vm2824_vm14 }
 0x3b5   : > { %v996_v11 = vadd.f32 %v992_v7, %v965_v15  ;;  %v997_v51 = vadd.f32 %v993_v26, %v966_v1  ;;  %v2819_v1 = vld [vmem:[#allocation15_spill] sm:$0xff] }
 0x3b7   : > { %v1052_v37 = vpop.permute.xlu0 %1051  ;;  %v1021_v16 = vpop.permute.xlu1 %1020  ;;  %v1027_v50 = vadd.f32 %v1023_v10, %v996_v11 }
 0x3b8   : > { %v1024_v40 = vsel %vm1022_vm6, %v1019_v54, %v1021_v16 }
 0x3b9   : > { %v1028_v3 = vadd.f32 %v1024_v40, %v997_v51  ;;  %v2821_v40 = vld [vmem:[#allocation14_spill] sm:$0xff] }
 0x3bb   : > { %v1081_v48 = vpop.permute.xlu0 %1080  ;;  %v1050_v43 = vpop.permute.xlu1 %1049 }
 0x3bc   : > { %v1054_v63 = vsel %vm1053_vm7, %v1048_v57, %v1050_v43  ;;  %v1055_v9 = vsel %vm1053_vm7, %v1050_v43, %v1052_v37  ;;  %v1085_v41 = vsel %vm1084_vm8, %v1079_v25, %v1081_v48  ;;  %v2813_v43 = vld [vmem:[#allocation13_spill] sm:$0xff] }
 0x3bd   : > { %v1058_v27 = vadd.f32 %v1054_v63, %v1027_v50  ;;  %v1059_v20 = vadd.f32 %v1055_v9, %v1028_v3 }
 0x3bf   : > { %v2676_v14 = vpop.permute.xlu0 %1237  ;;  %v1083_v30 = vpop.permute.xlu1 %1082  ;;  %v1089_v59 = vadd.f32 %v1085_v41, %v1058_v27 }
 0x3c0   : > { %v1086_v29 = vsel %vm1084_vm8, %v1081_v48, %v1083_v30 }
 0x3c1   : > { %v1090_v34 = vadd.f32 %v1086_v29, %v1059_v20  ;;  %v2825_v20 = vld [vmem:[#allocation17_spill] sm:$0xff] }
 0x3c3   : > { %v1112_v2 = vpop.permute.xlu0 %1111  ;;  %v1240_v17 = vpop.permute.xlu1 %1239 }
 0x3c4   : > { %v1243_v30 = vsel %vm2814_vm15, %v2676_v14, %v1240_v17  ;;  %v1244_v11 = vsel %vm2816_vm0, %v1240_v17, %v2815_v33  ;;  %v1767_v33 = vld [vmem:[%s2123_s7 + $0x38] sm:$0xff] }
 0x3c7   : > { %v1116_v42 = vpop.permute.xlu0 %1115  ;;  %v1143_v24 = vpop.permute.xlu1 %1142 }
 0x3cb   : > { %v1145_v19 = vpop.permute.xlu0 %1144  ;;  %v1114_v6 = vpop.permute.xlu1 %1113 }
 0x3cc   : > { %v1118_v45 = vsel %vm1117_vm9, %v1112_v2, %v1114_v6  ;;  %v1119_v32 = vsel %vm1117_vm9, %v1114_v6, %v1116_v42  ;;  %v1149_v58 = vsel %vm1148_vm10, %v1143_v24, %v1145_v19  ;;  %v2827_v6 = vld [vmem:[#allocation16_spill] sm:$0xff] }
 0x3cd   : > { %v1122_v8 = vadd.f32 %v1118_v45, %v1089_v59  ;;  %v1123_v52 = vadd.f32 %v1119_v32, %v1090_v34 }
 0x3cf   : > { %v1183_v31 = vpop.permute.xlu0 %1182  ;;  %v1153_v57 = vadd.f32 %v1149_v58, %v1122_v8  ;;  %v1147_v4 = vpop.permute.xlu1 %1146 }
 0x3d0   : > { %v1150_v25 = vsel %vm1148_vm10, %v1145_v19, %v1147_v4  ;;  %v1408_v4 = vlaneseq }
 0x3d1   : > { %v1154_v39 = vadd.f32 %v1150_v25, %v1123_v52  ;;  %v1163_v53 = vadd.f32 %v1159_v23, %v1153_v57 }
 0x3d3   : > { %v1214_v56 = vpop.permute.xlu0 %1213  ;;  %v1185_v55 = vpop.permute.xlu1 %1184  ;;  %v1164_v22 = vadd.f32 %v1160_v18, %v1154_v39  ;;  %v1409_v39 = vshrl.u32 %v1408_v4, 7 }
 0x3d4   : > { %v1188_v60 = vsel %vm684_vm12, %v1183_v31, %v1185_v55  ;;  %v1189_v28 = vsel %vm684_vm12, %v1185_v55, %v2812_v12  ;;  %v1218_v13 = vsel %vm714_vm13, %v1214_v56, %v2813_v43  ;;  %vm2817_vm12 = vcmask 973824  }
 0x3d5   : > { %v1192_v62 = vadd.f32 %v1188_v60, %v1163_v53  ;;  %v1193_v38 = vadd.f32 %v1189_v28, %v1164_v22  ;;  %v1410_v18 = vsub.s32 5, %v1409_v39  ;;  %v1763_v60 = vld [vmem:[%s2123_s7 + $0x30] sm:$0xff] }
 0x3d6   : > { %v1764_v28 = vld [vmem:[%s2123_s7 + $0x10] sm:$0xff] }
 0x3d7   : > { %v1269_v47 = vpop.permute.xlu0 %1268  ;;  %v1212_v54 = vpop.permute.xlu1 %1211  ;;  %v1222_v21 = vadd.f32 %v1218_v13, %v1193_v38 }
 0x3d8   : > { %v1217_v37 = vsel %vm714_vm13, %v1212_v54, %v1214_v56  ;;  %vm2820_vm13 = vmmov %vm2817_vm12 }
 0x3d9   : > { %v1221_v36 = vadd.f32 %v1217_v37, %v1192_v62  ;;  %v1248_v2 = vadd.f32 %v1244_v11, %v1222_v21  ;;  %v1273_v50 = vsel %vm2820_vm13, %v1269_v47, %v2819_v1 }
 0x3db   : > { %v1296_v16 = vpop.permute.xlu0 %1295  ;;  %v1267_v48 = vpop.permute.xlu1 %1266  ;;  %v1247_v0 = vadd.f32 %v1243_v30, %v1221_v36  ;;  %v1277_v51 = vadd.f32 %v1273_v50, %v1248_v2  ;;  %v1766_v30 = vld [vmem:[%s2123_s7 + $0x8] sm:$0xff] }
 0x3dc   : > { %v1272_v49 = vsel %vm2817_vm12, %v1267_v48, %v1269_v47  ;;  %v1762_v47 = vld [vmem:[%s2123_s7] sm:$0xff] }
 0x3dd   : > { %v1276_v26 = vadd.f32 %v1272_v49, %v1247_v0  ;;  %v1768_v49 = vld [vmem:[%s2123_s7 + $0x18] sm:$0xff] }
 0x3df   : > { %v1329_v7 = vpop.permute.xlu0 %1328  ;;  %v1298_v15 = vpop.permute.xlu1 %1297 }
 0x3e0   : > { %v1301_v10 = vsel %vm2818_vm3, %v1296_v16, %v1298_v15  ;;  %v1302_v42 = vsel %vm2822_vm1, %v1298_v15, %v2821_v40  ;;  %v1333_v59 = vsel %vm2826_vm4, %v1329_v7, %v2825_v20  ;;  %v1765_v16 = vld [vmem:[%s2123_s7 + $0x20] sm:$0xff] }
 0x3e1   : > { %v1305_v27 = vadd.f32 %v1301_v10, %v1276_v26  ;;  %v1306_v9 = vadd.f32 %v1302_v42, %v1277_v51 }
 0x3e3   : > { %v1327_v35 = vpop.permute.xlu1 %1326  ;;  %v1356_v63 = vpop.permute.xlu0 %1355  ;;  %v1337_v45 = vadd.f32 %v1333_v59, %v1306_v9 }
 0x3e4   : > { %v1332_v14 = vsel %vm2823_vm11, %v1327_v35, %v1329_v7  ;;  %v1769_v35 = vld [vmem:[%s2123_s7 + $0x28] sm:$0xff]  ;;  %s1461_s7 = scalar_lea.sflag [#allocation4], %s2117_s23 }
 0x3e5   : > { %v1336_v3 = vadd.f32 %v1332_v14, %v1305_v27 }
 0x3e7   : > { %v1358_v24 = vpop.permute.xlu1 %1357  ;;  %v1387_v41 = vpop.permute.xlu0 %1386 }
 0x3e8   : > { %v1361_v17 = vsel %vm2824_vm14, %v1356_v63, %v1358_v24  ;;  %v1362_v5 = vsel %vm2828_vm5, %v1358_v24, %v2827_v6 }
 0x3e9   : > { %v1365_v29 = vadd.f32 %v1361_v17, %v1336_v3  ;;  %v1366_v34 = vadd.f32 %v1362_v5, %v1337_v45 }
 0x3eb   : > { %v1385_v19 = vpop.permute.xlu1 %1384 }
 0x3ec   : > { %v1390_v61 = vsel %vm899_vm2, %v1385_v19, %v1387_v41 }
 0x3ed   : > { %v1394_v32 = vadd.f32 %v1390_v61, %v1365_v29 }
 0x3ef   : > { %v1582_v8 = vmul.f32 -1.442695, %v1394_v32  ;;  %v1389_v44 = vpop.permute.xlu1 %1388 }
 0x3f0   : > { %v1391_v46 = vsel %vm899_vm2, %v1387_v41, %v1389_v44 }
 0x3f1   : > { %1752 = vpow2.f32 %v1582_v8  ;;  %v1395_v58 = vadd.f32 %v1391_v46, %v1366_v34 }
 0x3f3   : > { %v1583_v31 = vmul.f32 -1.442695, %v1395_v58 }
 0x3f5   : > { %1754 = vpow2.f32 %v1583_v31 }
 0x3f8   : > { %v1427_v53 = vpop.permute.xlu0 %1426 }
 0x3fb   : > { %v1753_v52 = vpop.eup %1752 }
 0x3fc   : > { %v1402_v57 = vadd.f32 1.0, %v1753_v52  ;;  %v1442_v48 = vpop.permute.xlu0 %1441 }
 0x3fe   : > { %1756 = vrcp.f32 %v1402_v57 }
 0x3ff   : > { %v1755_v23 = vpop.eup %1754 }
 0x400   : > { %v1403_v25 = vadd.f32 1.0, %v1755_v23  ;;  %v1432_v56 = vpop.permute.xlu1 %1431 }
 0x402   : > { %1758 = vrcp.f32 %v1403_v25 }
 0x404   : > { %v1437_v7 = vpop.permute.xlu1 %1436 }
 0x408   : > { %v1757_v55 = vpop.eup %1756 }
 0x409   : > { %v1411_v22 = vrot.slane %v1757_v55, %v1410_v18 }
 0x40b   : > { %v1416_v54 = vmul.f32 %v1762_v47, %v1411_v22  ;;  %v1422_v12 = vmul.f32 %v1763_v60, %v1411_v22  ;;  %v1418_v37 = vmul.f32 %v1764_v28, %v1411_v22  ;;  %v1420_v62 = vmul.f32 %v1765_v16, %v1411_v22 }
 0x40c   : > { %v1759_v38 = vpop.eup %1758 }
 0x40d   : > { %v1415_v36 = vrot.slane %v1759_v38, %v1410_v18  ;;  %v1444_v43 = vmul.f32 %v1427_v53, %v1416_v54  ;;  %v1450_v13 = vmul.f32 %v1442_v48, %v1422_v12  ;;  %v1446_v21 = vmul.f32 %v1432_v56, %v1418_v37 }
 0x40e   : > { %v1448_v15 = vmul.f32 %v1437_v7, %v1420_v62 }
 0x40f   : > { %v1417_v0 = vmul.f32 %v1766_v30, %v1415_v36  ;;  %1452 = vst [vmem:[%s257_s15] sm:$0xff] %v1444_v43  ;;  %v1423_v11 = vmul.f32 %v1767_v33, %v1415_v36  ;;  %1458 = vst [vmem:[%s257_s15 + $0x30] sm:$0xff] %v1450_v13  ;;  %v1419_v2 = vmul.f32 %v1768_v49, %v1415_v36 }
 0x410   : > { %1454 = vst [vmem:[%s257_s15 + $0x10] sm:$0xff] %v1446_v21  ;;  %v1421_v10 = vmul.f32 %v1769_v35, %v1415_v36  ;;  %1456 = vst [vmem:[%s257_s15 + $0x20] sm:$0xff] %v1448_v15 }
 0x411   : > { %v1445_v26 = vmul.f32 %v1427_v53, %v1417_v0  ;;  %v1451_v63 = vmul.f32 %v1442_v48, %v1423_v11  ;;  %v1447_v1 = vmul.f32 %v1432_v56, %v1419_v2 }
 0x412   : > { %v1449_v50 = vmul.f32 %v1437_v7, %v1421_v10 }
 0x413   : > { %1453 = vst [vmem:[%s257_s15 + $0x8] sm:$0xff] %v1445_v26  ;;  %1459 = vst [vmem:[%s257_s15 + $0x38] sm:$0xff] %v1451_v63 }
 0x414   : > { %1455 = vst [vmem:[%s257_s15 + $0x18] sm:$0xff] %v1447_v1  ;;  %1457 = vst [vmem:[%s257_s15 + $0x28] sm:$0xff] %v1449_v50 }
 0x415   : > { %1841 = shalt.err (!%p1838_p7)
}
 0x416   : > { %s1842_s10 = scalar_lea.hbm %s2727_s12, 1024  ;;  %s1846_s6 = scalar_lea.hbm %s2777_s5, 2048 }
 0x417   : > { %p1843_p9 = scmp.ne.s32.totalorder %s2727_s12, %s1842_s10  ;;  %p1847_p5 = scmp.lt.u32.totalorder %s2727_s12, %s2777_s5 }
 0x418   : > { %p1848_p11 = scmp.lt.u32.totalorder %s1846_s6, %s1842_s10  ;;  %p1850_p4 = scmp.lt.u32.totalorder %s1842_s10, %s2727_s12 }
 0x419   : > { %p1844_p1 = pnand %p1843_p9, %p2066_p12 }
 0x41a   : > { %p1849_p2 = por %p1848_p11, %p1847_p5 }
 0x41b   : > { %p1845_p0 = pneg %p1844_p1 }
 0x41c   : > { %p1851_p6 = por %p1850_p4, %p1849_p2 }
 0x41e   : > { %p1852_p8 = pnand %p1851_p6, %p1845_p0 }
 0x420   : > { %1855 = shalt.err (!%p1852_p8)
}
 0x421   : > { %s1941_s29 = smov 256   ;;  %s2830_s22 = smov 16  }
 0x422   : > { %1644 = dma.vmem_to_hbm [thread:$0]  (%p2066_p12), %s2722_s13, 1024, %s2727_s12, %s1461_s7, %s1941_s29, %s1941_s29, %s2830_s22  }
 0x423 PF: > { %s1489_s28 = sand.u32 1, %s1886_s18   ;;  %p2831_p10 = scmp.ne.s32.totalorder %s2793_s25, 0 }
 0x424   : > { %p2832_p13 = scmp.ge.s32.totalorder %s1898_s21, 2  ;;  %s1490_s11 = scalar_lea.sflag [#allocation4], %s1489_s28 }
 0x426   : > { %p1655_p3 = pnand %p2832_p13, %p2831_p10 }
 0x428   : > { %1881 = dma.done.wait (!%p1655_p3), %s1490_s11, 1024  }
 0x429   : > { %1883 = vsyncadd (!%p1655_p3), %s1490_s11, 4294966272  ;;  %p19_p7 = scmp.ge.s32.totalorder %s2028_s30, 4   ;;  %s2833_s18 = smov %s1890_s19 }
 0x42a   : > { %s2834_s19 = smov %s1894_s20  ;;  %s2835_s20 = smov %s2062_s8 }
 0x42b   : > { %s2836_s21 = smov %s2028_s30  ;;  %21 = sbr.rel (!%p19_p7) target bundleno = 6 (0x6), region = 89 }
 0x432   :  { %1495 = vsyncpa [#allocation3], 1 }
 0x433   :  { %1497 = vsyncpa [#allocation3 + $0x1], 1 }
 0x434   :  { %1498 = vsyncpa [#allocation6], 1 }
 0x435   :  { %1499 = vsyncpa [#allocation4], 1 }
 0x436   :  { %1501 = vsyncpa [#allocation4 + $0x1], 1 }

</bundles_post_ra>
